<compile_context>
chip_gen: v7x
topology: tpu7x:2x2x1
jax: 0.10.0
libtpu: 0.0.40
codegen_flags: <defaults>
</compile_context>

<pallas_src>
import functools

import jax
import jax.numpy as jnp
from jax.experimental import pallas as pl
from jax.experimental.pallas import tpu as pltpu


LANE = 128
SUBLANE_BF16 = 16


def _round_up(v, m):
    return ((v + m - 1) // m) * m


def _pad_to(a, shape):
    pads = [(0, s - d) for d, s in zip(a.shape, shape)]
    if all(p == (0, 0) for p in pads):
        return a
    return jnp.pad(a, pads)


def _vmem_limit_bytes():
    # Per-generation scoped-VMEM budget: ~3/4 of physical, capped at 96 MiB.
    # v5e/v6e (128 MiB physical) -> 96 MiB; v7x (64 MiB physical) -> 48 MiB.
    try:
        cap = pltpu.get_tpu_info().vmem_capacity_bytes
    except Exception:
        cap = 128 * 1024 * 1024
    return int(min(96 * 1024 * 1024, (cap * 3) // 4))


def _compiler_params():
    # Batch axis is "parallel" (megacore shards it on v7x); the token axis must
    # be "arbitrary" because the per-batch h1 scratch is carried across it.
    return pltpu.CompilerParams(
        dimension_semantics=("parallel", "arbitrary"),
        vmem_limit_bytes=_vmem_limit_bytes(),
    )


# ------------------------- Fused kernel --------------------------------------

def sage_fused_kernel(xq_ref, idx_ref, src_ref, w1_ref, b1_ref, w2_ref, b2_ref,
                      o_ref, h1_ref, *, k):
    """Fused nn1 + neighbor gather + max-over-K + nn2 (+ ReLU) for one token tile.

    h1_ref is a per-batch VMEM scratch holding relu(src @ W1 + b1) for ALL
    source tokens; it is computed once per batch (token step 0) and reused by
    every token tile, so h1 never touches HBM.
    """
    # ---- nn1, once per batch -------------------------------------------------
    @pl.when(pl.program_id(1) == 0)
    def _():
        src = src_ref[0]                                                # (Ns, Cp) bf16
        h = jnp.dot(src, w1_ref[...], preferred_element_type=jnp.float32)
        h1_ref[...] = jnp.maximum(h + b1_ref[...], 0.0).astype(h1_ref.dtype)

    xq = xq_ref[0]                                                      # (T, Cp)  bf16
    h1 = h1_ref[...]                                                    # (Ns, Cp) bf16
    idx = idx_ref[0]                                                    # (T, K)   int32
    tq, ns = xq.shape[0], h1.shape[0]

    # ---- neighbor gather + max over K ----------------------------------------
    # One-hot MXU gather as a single stacked (K*T, Ns) @ (Ns, Cp) matmul: one
    # long systolic push instead of K push/drain sequences, indices stay in the
    # kernel and the gathered (T, K, Cp) tensor never exists in HBM.
    # TODO(synk): at production Ns (>~512) replace the one-hot gather with a
    # scalar-prefetch-driven DMA/take gather; one-hot costs O(K*T*Ns*Cp) MXU
    # FLOPs which dominates once Ns reaches the thousands.
    lanes = jax.lax.broadcasted_iota(jnp.int32, (tq, ns), 1)
    onehot = jnp.concatenate(
        [(lanes == idx[:, kk:kk + 1]).astype(jnp.bfloat16) for kk in range(k)],
        axis=0)                                                         # (K*T, Ns) bf16
    g_all = jnp.dot(onehot, h1, preferred_element_type=jnp.float32)     # (K*T, Cp) f32
    agg = g_all[:tq]
    for kk in range(1, k):                                              # K is small; unrolled
        agg = jnp.maximum(agg, g_all[kk * tq:(kk + 1) * tq])            # (T, Cp)  f32

    # ---- nn2: relu([x, agg] @ W2 + b2) ----------------------------------------
    # Single 2*Cp-deep contraction: the in-register lane concat fills the full
    # 256-wide MXU on v6e/v7x (two half-depth matmuls would half-fill it).
    cat = jnp.concatenate([xq, agg.astype(jnp.bfloat16)], axis=-1)      # (T, 2Cp) bf16
    out = jnp.dot(cat, w2_ref[...], preferred_element_type=jnp.float32)
    o_ref[0] = jnp.maximum(out + b2_ref[...], 0.0).astype(o_ref.dtype)


# ------------------------- Pallas wrapper ------------------------------------

def _sage_call(xq, idx, src, w1, b1, w2, b2, *, tile, out_dtype):
    B, Nqp, Cp = xq.shape
    K = idx.shape[-1]
    Nsp = src.shape[1]
    Cop = w2.shape[1]
    return pl.pallas_call(
        functools.partial(sage_fused_kernel, k=K),
        out_shape=jax.ShapeDtypeStruct((B, Nqp, Cop), out_dtype),
        grid_spec=pltpu.PrefetchScalarGridSpec(
            num_scalar_prefetch=0,
            grid=(B, Nqp // tile),
            in_specs=[
                pl.BlockSpec((1, tile, Cp), lambda b, t: (b, t, 0)),
                # TODO(synk): if a scalar-driven gather is adopted, move the
                # neighbor indices to SMEM via num_scalar_prefetch instead of
                # this lane-sparse (tile, K) VMEM block.
                pl.BlockSpec((1, tile, K), lambda b, t: (b, t, 0)),
                # Per-batch source block: constant over the token axis, so it is
                # DMA'd once per batch and stays VMEM resident.
                pl.BlockSpec((1, Nsp, Cp), lambda b, t: (b, 0, 0)),
                pl.BlockSpec((Cp, Cp), lambda b, t: (0, 0)),        # resident weights
                pl.BlockSpec((1, Cp), lambda b, t: (0, 0)),
                pl.BlockSpec((2 * Cp, Cop), lambda b, t: (0, 0)),
                pl.BlockSpec((1, Cop), lambda b, t: (0, 0)),
            ],
            out_specs=pl.BlockSpec((1, tile, Cop), lambda b, t: (b, t, 0)),
            scratch_shapes=[pltpu.VMEM((Nsp, Cp), jnp.bfloat16)],   # per-batch h1
        ),
        compiler_params=_compiler_params(),
    )(xq, idx, src, w1, b1, w2, b2)


# ------------------------- GraphSAGE forward ---------------------------------

def graphsage_forward_tokens(x_tok, nbr_idx, params, y_tok=None, *,
                             tile_q=256, out_dtype=jnp.float32):
    """GraphSAGE forward on token-major activations.

    x_tok:   (B, N,  C)  query node features
    nbr_idx: (B, N,  K)  int   neighbor indices into the source tokens
    y_tok:   (B, Ns, C)  optional gather source (defaults to x_tok)
    Returns (B, N, C_out).  Keeping activations in (B, N, C) across layers
    avoids the per-layer transpose passes of the NCHW interface.
    """
    B, N, C = x_tok.shape
    src_tok = x_tok if y_tok is None else y_tok
    Ns = src_tok.shape[1]
    K = nbr_idx.shape[-1]
    C_out = params["w2"].shape[1]

    Cp = _round_up(C, LANE)
    Cop = _round_up(C_out, LANE)

    tq = tile_q if N >= tile_q else _round_up(N, SUBLANE_BF16)
    Nqp = _round_up(N, tq)
    Nsp = _round_up(Ns, SUBLANE_BF16)

    # Zero-pad to lane-dense channel widths / tile-aligned token counts (bf16
    # matmul operands, f32 accumulation).
    xq_p = _pad_to(x_tok, (B, Nqp, Cp)).astype(jnp.bfloat16)
    src_p = _pad_to(src_tok, (B, Nsp, Cp)).astype(jnp.bfloat16)
    # Clamp so an out-of-range index can never gather a padded (garbage) h1 row.
    idx_p = _pad_to(jnp.clip(nbr_idx.astype(jnp.int32), 0, Ns - 1), (B, Nqp, K))

    w1 = _pad_to(params["w1"], (Cp, Cp)).astype(jnp.bfloat16)
    b1 = _pad_to(params["b1"].reshape(1, -1), (1, Cp)).astype(jnp.float32)
    w2 = params["w2"]                                                # (2C, C_out)
    # Stack nn2's weight so [x | agg] is one 2*Cp-deep contraction (no concat in HBM).
    w2_stacked = jnp.concatenate(
        [_pad_to(w2[:C], (Cp, Cop)), _pad_to(w2[C:], (Cp, Cop))], axis=0
    ).astype(jnp.bfloat16)                                           # (2Cp, Cop)
    b2 = _pad_to(params["b2"].reshape(1, -1), (1, Cop)).astype(jnp.float32)

    out = _sage_call(xq_p, idx_p, src_p, w1, b1, w2_stacked, b2,
                     tile=tq, out_dtype=out_dtype)                   # (B, Nqp, Cop)
    return out[:, :N, :C_out]                                        # strip padding


def graphsage_forward(x, edge_index, params, y=None, *, tile_q=256,
                      out_dtype=jnp.float32):
    """PyTorch-layout interface: x (B, C, N, 1), edge_index (2, B, N, K).

    Multi-layer stacks should prefer graphsage_forward_tokens to keep the
    (B, N, C) token layout and skip these relayout passes.
    """
    x_tok = jnp.transpose(x[..., 0], (0, 2, 1))                      # (B, N, C)
    y_tok = jnp.transpose(y[..., 0], (0, 2, 1)) if y is not None else None
    out = graphsage_forward_tokens(x_tok, edge_index[0], params, y_tok,
                                   tile_q=tile_q, out_dtype=out_dtype)
    return jnp.transpose(out, (0, 2, 1))[..., None]                  # (B, Cout, N, 1)


# ------------------------- Pure-JAX reference --------------------------------

def graphsage_reference(x, edge_index, params, y=None):
    hp = jax.lax.Precision.HIGHEST
    idx = edge_index[0]
    src = (y if y is not None else x)[..., 0]                        # (B, C, Ns)
    x_j = jax.vmap(lambda s, i: s[:, i])(src, idx)                   # (B, C, N, K)
    h = jnp.einsum('bcnk,cd->bdnk', x_j, params['w1'], precision=hp)
    h = jnp.maximum(h + params['b1'][None, :, None, None], 0.0)
    agg = jnp.max(h, axis=-1)                                        # (B, C, N)
    cat = jnp.concatenate([x[..., 0], agg], axis=1)                  # (B, 2C, N)
    o = jnp.einsum('bcn,cd->bdn', cat, params['w2'], precision=hp)
    o = jnp.maximum(o + params['b2'][None, :, None], 0.0)
    return o[..., None]                                              # (B, Cout, N, 1)


# ------------------------- Parameter init ------------------------------------

def init_params(key, c_in, c_out):
    k1, k2, k3, k4 = jax.random.split(key, 4)

    def uni(k, shape, fan_in):
        bound = 1.0 / (fan_in ** 0.5)
        return jax.random.uniform(k, shape, jnp.float32, -bound, bound)

    return {
        "w1": uni(k1, (c_in, c_in), c_in),            # nn1: Conv2d(C, C, 1)
        "b1": uni(k2, (c_in,), c_in),
        "w2": uni(k3, (2 * c_in, c_out), 2 * c_in),   # nn2: Conv2d(2C, Cout, 1)
        "b2": uni(k4, (c_out,), 2 * c_in),
    }


# ------------------------- Main ----------------------------------------------

if __name__ == "__main__":
    B, C_in, C_out, N, K = 2, 16, 32, 64, 9
    key = jax.random.PRNGKey(0)
    kx, ki, kp = jax.random.split(key, 3)

    x = jax.random.normal(kx, (B, C_in, N, 1), jnp.float32)
    nbr = jax.random.randint(ki, (B, N, K), 0, N, dtype=jnp.int32)
    ctr = jnp.broadcast_to(jnp.arange(N, dtype=jnp.int32)[None, :, None], (B, N, K))
    edge_index = jnp.stack([nbr, ctr], axis=0)                       # (2, B, N, K)
    params = init_params(kp, C_in, C_out)

    fwd = jax.jit(graphsage_forward)
    out = fwd(x, edge_index, params)
    jax.block_until_ready(out)
    assert out.shape == (B, C_out, N, 1) and out.dtype == jnp.float32

    # bf16 matmul operands with f32 accumulation -> generous tolerance.
    ref = graphsage_reference(x, edge_index, params)
    err = float(jnp.max(jnp.abs(out - ref)))
    assert err < 0.25, f"numerics mismatch, max abs err = {err}"

    print("KERNEL_OK")
</pallas_src>

<mosaic_0001>
module attributes {stable_mosaic.version = 11 : i64} {
  func.func @sage_fused_kernel(%arg0: i32, %arg1: i32, %arg2: memref<1x64x128xbf16, #tpu.memory_space<vmem>>, %arg3: memref<1x64x9xi32, #tpu.memory_space<vmem>>, %arg4: memref<1x64x128xbf16, #tpu.memory_space<vmem>>, %arg5: memref<128x128xbf16, #tpu.memory_space<vmem>>, %arg6: memref<1x128xf32, #tpu.memory_space<vmem>>, %arg7: memref<256x128xbf16, #tpu.memory_space<vmem>>, %arg8: memref<1x128xf32, #tpu.memory_space<vmem>>, %arg9: memref<1x64x128xf32, #tpu.memory_space<vmem>>, %arg10: memref<64x128xbf16, #tpu.memory_space<vmem>>) attributes {dimension_semantics = [#tpu.dimension_semantics<parallel>, #tpu.dimension_semantics<arbitrary>], iteration_bounds = array<i64: 2, 1>, scalar_prefetch = 0 : i64, scratch_operands = 1 : i64, tpu.core_type = #tpu.core_type<tc>, window_params = [{transform_indices = @transform_0, window_bounds = array<i64: 1, 64, 128>}, {transform_indices = @transform_1, window_bounds = array<i64: 1, 64, 9>}, {transform_indices = @transform_2, window_bounds = array<i64: 1, 64, 128>}, {pipeline_mode = #tpu.pipeline_mode<synchronous>, transform_indices = @transform_3, window_bounds = array<i64: 128, 128>}, {pipeline_mode = #tpu.pipeline_mode<synchronous>, transform_indices = @transform_4, window_bounds = array<i64: 1, 128>}, {pipeline_mode = #tpu.pipeline_mode<synchronous>, transform_indices = @transform_5, window_bounds = array<i64: 256, 128>}, {pipeline_mode = #tpu.pipeline_mode<synchronous>, transform_indices = @transform_6, window_bounds = array<i64: 1, 128>}, {transform_indices = @transform_7, window_bounds = array<i64: 1, 64, 128>}]} {
    %c0_i32 = arith.constant 0 : i32
    %0 = arith.cmpi eq, %arg1, %c0_i32 : i32
    %1 = arith.extui %0 : i1 to i32
    %c0_i32_0 = arith.constant 0 : i32
    %2 = arith.cmpi ne, %1, %c0_i32_0 : i32
    scf.if %2 {
      %c0_17 = arith.constant 0 : index
      %c0_18 = arith.constant 0 : index
      %c0_19 = arith.constant 0 : index
      %94 = vector.load %arg4[%c0_17, %c0_18, %c0_19] : memref<1x64x128xbf16, #tpu.memory_space<vmem>>, vector<1x64x128xbf16>
      %95 = vector.shape_cast %94 : vector<1x64x128xbf16> to vector<64x128xbf16>
      %c0_20 = arith.constant 0 : index
      %c0_21 = arith.constant 0 : index
      %96 = vector.load %arg5[%c0_20, %c0_21] : memref<128x128xbf16, #tpu.memory_space<vmem>>, vector<128x128xbf16>
      %cst_22 = arith.constant dense<0.000000e+00> : vector<64x128xf32>
      %97 = tpu.matmul %95, %96, %cst_22 {dimension_numbers = #tpu.dot_dimension_numbers<[1], [0], [0], [1], [0, 0, 1, 1], [], []>} : vector<64x128xbf16>, vector<128x128xbf16>, vector<64x128xf32> -> vector<64x128xf32>
      %c0_23 = arith.constant 0 : index
      %c0_24 = arith.constant 0 : index
      %98 = vector.load %arg6[%c0_23, %c0_24] : memref<1x128xf32, #tpu.memory_space<vmem>>, vector<1x128xf32>
      %99 = vector.broadcast %98 : vector<1x128xf32> to vector<64x128xf32>
      %100 = arith.addf %97, %99 : vector<64x128xf32>
      %cst_25 = arith.constant 0.000000e+00 : f32
      %101 = vector.broadcast %cst_25 : f32 to vector<64x128xf32>
      %102 = arith.maximumf %100, %101 : vector<64x128xf32>
      %103 = arith.truncf %102 : vector<64x128xf32> to vector<64x128xbf16>
      %c0_26 = arith.constant 0 : index
      %c0_27 = arith.constant 0 : index
      %104 = vector.load %arg10[%c0_26, %c0_27] : memref<64x128xbf16, #tpu.memory_space<vmem>>, vector<64x128xbf16>
      tpu.vector_store %arg10[%c0_26, %c0_27], %103 {strides = array<i32>} : memref<64x128xbf16, #tpu.memory_space<vmem>>, vector<64x128xbf16>,
    } else {
    }
    %c0 = arith.constant 0 : index
    %c0_1 = arith.constant 0 : index
    %c0_2 = arith.constant 0 : index
    %3 = vector.load %arg2[%c0, %c0_1, %c0_2] : memref<1x64x128xbf16, #tpu.memory_space<vmem>>, vector<1x64x128xbf16>
    %4 = vector.shape_cast %3 : vector<1x64x128xbf16> to vector<64x128xbf16>
    %c0_3 = arith.constant 0 : index
    %c0_4 = arith.constant 0 : index
    %5 = vector.load %arg10[%c0_3, %c0_4] : memref<64x128xbf16, #tpu.memory_space<vmem>>, vector<64x128xbf16>
    %c0_5 = arith.constant 0 : index
    %c0_6 = arith.constant 0 : index
    %c0_7 = arith.constant 0 : index
    %6 = vector.load %arg3[%c0_5, %c0_6, %c0_7] : memref<1x64x9xi32, #tpu.memory_space<vmem>>, vector<1x64x9xi32>
    %7 = vector.shape_cast %6 : vector<1x64x9xi32> to vector<64x9xi32>
    %8 = tpu.iota {dimensions = array<i32: 1>} : vector<64x64xi32>
    %9 = vector.extract_strided_slice %7 {offsets = [0, 0], sizes = [64, 1], strides = [1, 1]} : vector<64x9xi32> to vector<64x1xi32>
    %10 = vector.broadcast %9 : vector<64x1xi32> to vector<64x64xi32>
    %11 = arith.cmpi eq, %8, %10 : vector<64x64xi32>
    %12 = arith.extui %11 : vector<64x64xi1> to vector<64x64xi32>
    %13 = arith.sitofp %12 : vector<64x64xi32> to vector<64x64xf32>
    %14 = arith.truncf %13 : vector<64x64xf32> to vector<64x64xbf16>
    %15 = vector.extract_strided_slice %7 {offsets = [0, 1], sizes = [64, 1], strides = [1, 1]} : vector<64x9xi32> to vector<64x1xi32>
    %16 = vector.broadcast %15 : vector<64x1xi32> to vector<64x64xi32>
    %17 = arith.cmpi eq, %8, %16 : vector<64x64xi32>
    %18 = arith.extui %17 : vector<64x64xi1> to vector<64x64xi32>
    %19 = arith.sitofp %18 : vector<64x64xi32> to vector<64x64xf32>
    %20 = arith.truncf %19 : vector<64x64xf32> to vector<64x64xbf16>
    %21 = vector.extract_strided_slice %7 {offsets = [0, 2], sizes = [64, 1], strides = [1, 1]} : vector<64x9xi32> to vector<64x1xi32>
    %22 = vector.broadcast %21 : vector<64x1xi32> to vector<64x64xi32>
    %23 = arith.cmpi eq, %8, %22 : vector<64x64xi32>
    %24 = arith.extui %23 : vector<64x64xi1> to vector<64x64xi32>
    %25 = arith.sitofp %24 : vector<64x64xi32> to vector<64x64xf32>
    %26 = arith.truncf %25 : vector<64x64xf32> to vector<64x64xbf16>
    %27 = vector.extract_strided_slice %7 {offsets = [0, 3], sizes = [64, 1], strides = [1, 1]} : vector<64x9xi32> to vector<64x1xi32>
    %28 = vector.broadcast %27 : vector<64x1xi32> to vector<64x64xi32>
    %29 = arith.cmpi eq, %8, %28 : vector<64x64xi32>
    %30 = arith.extui %29 : vector<64x64xi1> to vector<64x64xi32>
    %31 = arith.sitofp %30 : vector<64x64xi32> to vector<64x64xf32>
    %32 = arith.truncf %31 : vector<64x64xf32> to vector<64x64xbf16>
    %33 = vector.extract_strided_slice %7 {offsets = [0, 4], sizes = [64, 1], strides = [1, 1]} : vector<64x9xi32> to vector<64x1xi32>
    %34 = vector.broadcast %33 : vector<64x1xi32> to vector<64x64xi32>
    %35 = arith.cmpi eq, %8, %34 : vector<64x64xi32>
    %36 = arith.extui %35 : vector<64x64xi1> to vector<64x64xi32>
    %37 = arith.sitofp %36 : vector<64x64xi32> to vector<64x64xf32>
    %38 = arith.truncf %37 : vector<64x64xf32> to vector<64x64xbf16>
    %39 = vector.extract_strided_slice %7 {offsets = [0, 5], sizes = [64, 1], strides = [1, 1]} : vector<64x9xi32> to vector<64x1xi32>
    %40 = vector.broadcast %39 : vector<64x1xi32> to vector<64x64xi32>
    %41 = arith.cmpi eq, %8, %40 : vector<64x64xi32>
    %42 = arith.extui %41 : vector<64x64xi1> to vector<64x64xi32>
    %43 = arith.sitofp %42 : vector<64x64xi32> to vector<64x64xf32>
    %44 = arith.truncf %43 : vector<64x64xf32> to vector<64x64xbf16>
    %45 = vector.extract_strided_slice %7 {offsets = [0, 6], sizes = [64, 1], strides = [1, 1]} : vector<64x9xi32> to vector<64x1xi32>
    %46 = vector.broadcast %45 : vector<64x1xi32> to vector<64x64xi32>
    %47 = arith.cmpi eq, %8, %46 : vector<64x64xi32>
    %48 = arith.extui %47 : vector<64x64xi1> to vector<64x64xi32>
    %49 = arith.sitofp %48 : vector<64x64xi32> to vector<64x64xf32>
    %50 = arith.truncf %49 : vector<64x64xf32> to vector<64x64xbf16>
    %51 = vector.extract_strided_slice %7 {offsets = [0, 7], sizes = [64, 1], strides = [1, 1]} : vector<64x9xi32> to vector<64x1xi32>
    %52 = vector.broadcast %51 : vector<64x1xi32> to vector<64x64xi32>
    %53 = arith.cmpi eq, %8, %52 : vector<64x64xi32>
    %54 = arith.extui %53 : vector<64x64xi1> to vector<64x64xi32>
    %55 = arith.sitofp %54 : vector<64x64xi32> to vector<64x64xf32>
    %56 = arith.truncf %55 : vector<64x64xf32> to vector<64x64xbf16>
    %57 = vector.extract_strided_slice %7 {offsets = [0, 8], sizes = [64, 1], strides = [1, 1]} : vector<64x9xi32> to vector<64x1xi32>
    %58 = vector.broadcast %57 : vector<64x1xi32> to vector<64x64xi32>
    %59 = arith.cmpi eq, %8, %58 : vector<64x64xi32>
    %60 = arith.extui %59 : vector<64x64xi1> to vector<64x64xi32>
    %61 = arith.sitofp %60 : vector<64x64xi32> to vector<64x64xf32>
    %62 = arith.truncf %61 : vector<64x64xf32> to vector<64x64xbf16>
    %63 = tpu.concatenate %14, %20, %26, %32, %38, %44, %50, %56, %62 in 0 : vector<64x64xbf16>, vector<64x64xbf16>, vector<64x64xbf16>, vector<64x64xbf16>, vector<64x64xbf16>, vector<64x64xbf16>, vector<64x64xbf16>, vector<64x64xbf16>, vector<64x64xbf16> -> vector<576x64xbf16>
    %cst = arith.constant dense<0.000000e+00> : vector<576x128xf32>
    %64 = tpu.matmul %63, %5, %cst {dimension_numbers = #tpu.dot_dimension_numbers<[1], [0], [0], [1], [0, 0, 1, 1], [], []>} : vector<576x64xbf16>, vector<64x128xbf16>, vector<576x128xf32> -> vector<576x128xf32>
    %65 = vector.extract_strided_slice %64 {offsets = [0, 0], sizes = [64, 128], strides = [1, 1]} : vector<576x128xf32> to vector<64x128xf32>
    %66 = vector.extract_strided_slice %64 {offsets = [64, 0], sizes = [64, 128], strides = [1, 1]} : vector<576x128xf32> to vector<64x128xf32>
    %67 = arith.maximumf %65, %66 : vector<64x128xf32>
    %68 = vector.extract_strided_slice %64 {offsets = [128, 0], sizes = [64, 128], strides = [1, 1]} : vector<576x128xf32> to vector<64x128xf32>
    %69 = arith.maximumf %67, %68 : vector<64x128xf32>
    %70 = vector.extract_strided_slice %64 {offsets = [192, 0], sizes = [64, 128], strides = [1, 1]} : vector<576x128xf32> to vector<64x128xf32>
    %71 = arith.maximumf %69, %70 : vector<64x128xf32>
    %72 = vector.extract_strided_slice %64 {offsets = [256, 0], sizes = [64, 128], strides = [1, 1]} : vector<576x128xf32> to vector<64x128xf32>
    %73 = arith.maximumf %71, %72 : vector<64x128xf32>
    %74 = vector.extract_strided_slice %64 {offsets = [320, 0], sizes = [64, 128], strides = [1, 1]} : vector<576x128xf32> to vector<64x128xf32>
    %75 = arith.maximumf %73, %74 : vector<64x128xf32>
    %76 = vector.extract_strided_slice %64 {offsets = [384, 0], sizes = [64, 128], strides = [1, 1]} : vector<576x128xf32> to vector<64x128xf32>
    %77 = arith.maximumf %75, %76 : vector<64x128xf32>
    %78 = vector.extract_strided_slice %64 {offsets = [448, 0], sizes = [64, 128], strides = [1, 1]} : vector<576x128xf32> to vector<64x128xf32>
    %79 = arith.maximumf %77, %78 : vector<64x128xf32>
    %80 = vector.extract_strided_slice %64 {offsets = [512, 0], sizes = [64, 128], strides = [1, 1]} : vector<576x128xf32> to vector<64x128xf32>
    %81 = arith.maximumf %79, %80 : vector<64x128xf32>
    %82 = arith.truncf %81 : vector<64x128xf32> to vector<64x128xbf16>
    %83 = tpu.concatenate %4, %82 in 1 : vector<64x128xbf16>, vector<64x128xbf16> -> vector<64x256xbf16>
    %c0_8 = arith.constant 0 : index
    %c0_9 = arith.constant 0 : index
    %84 = vector.load %arg7[%c0_8, %c0_9] : memref<256x128xbf16, #tpu.memory_space<vmem>>, vector<256x128xbf16>
    %cst_10 = arith.constant dense<0.000000e+00> : vector<64x128xf32>
    %85 = tpu.matmul %83, %84, %cst_10 {dimension_numbers = #tpu.dot_dimension_numbers<[1], [0], [0], [1], [0, 0, 1, 1], [], []>} : vector<64x256xbf16>, vector<256x128xbf16>, vector<64x128xf32> -> vector<64x128xf32>
    %c0_11 = arith.constant 0 : index
    %c0_12 = arith.constant 0 : index
    %86 = vector.load %arg8[%c0_11, %c0_12] : memref<1x128xf32, #tpu.memory_space<vmem>>, vector<1x128xf32>
    %87 = vector.broadcast %86 : vector<1x128xf32> to vector<64x128xf32>
    %88 = arith.addf %85, %87 : vector<64x128xf32>
    %cst_13 = arith.constant 0.000000e+00 : f32
    %89 = vector.broadcast %cst_13 : f32 to vector<64x128xf32>
    %90 = arith.maximumf %88, %89 : vector<64x128xf32>
    %c0_14 = arith.constant 0 : index
    %c0_15 = arith.constant 0 : index
    %c0_16 = arith.constant 0 : index
    %91 = vector.load %arg9[%c0_14, %c0_15, %c0_16] : memref<1x64x128xf32, #tpu.memory_space<vmem>>, vector<1x64x128xf32>
    %92 = vector.shape_cast %91 : vector<1x64x128xf32> to vector<64x128xf32>
    %93 = vector.shape_cast %90 : vector<64x128xf32> to vector<1x64x128xf32>
    tpu.vector_store %arg9[%c0_14, %c0_15, %c0_16], %93 {strides = array<i32>} : memref<1x64x128xf32, #tpu.memory_space<vmem>>, vector<1x64x128xf32>,
    return
  }
  func.func @transform_0(%arg0: i32, %arg1: i32) -> (i32, i32, i32) {
    %c0_i32 = arith.constant 0 : i32
    %c0_i32_0 = arith.constant 0 : i32
    return %arg0, %arg1, %c0_i32 : i32, i32, i32
  }
  func.func @transform_1(%arg0: i32, %arg1: i32) -> (i32, i32, i32) {
    %c0_i32 = arith.constant 0 : i32
    %c0_i32_0 = arith.constant 0 : i32
    return %arg0, %arg1, %c0_i32 : i32, i32, i32
  }
  func.func @transform_2(%arg0: i32, %arg1: i32) -> (i32, i32, i32) {
    %c0_i32 = arith.constant 0 : i32
    %c0_i32_0 = arith.constant 0 : i32
    %c0_i32_1 = arith.constant 0 : i32
    return %arg0, %c0_i32, %c0_i32_0 : i32, i32, i32
  }
  func.func @transform_3(%arg0: i32, %arg1: i32) -> (i32, i32) {
    %c0_i32 = arith.constant 0 : i32
    %c0_i32_0 = arith.constant 0 : i32
    %c0_i32_1 = arith.constant 0 : i32
    return %c0_i32, %c0_i32_0 : i32, i32
  }
  func.func @transform_4(%arg0: i32, %arg1: i32) -> (i32, i32) {
    %c0_i32 = arith.constant 0 : i32
    %c0_i32_0 = arith.constant 0 : i32
    %c0_i32_1 = arith.constant 0 : i32
    return %c0_i32, %c0_i32_0 : i32, i32
  }
  func.func @transform_5(%arg0: i32, %arg1: i32) -> (i32, i32) {
    %c0_i32 = arith.constant 0 : i32
    %c0_i32_0 = arith.constant 0 : i32
    %c0_i32_1 = arith.constant 0 : i32
    return %c0_i32, %c0_i32_0 : i32, i32
  }
  func.func @transform_6(%arg0: i32, %arg1: i32) -> (i32, i32) {
    %c0_i32 = arith.constant 0 : i32
    %c0_i32_0 = arith.constant 0 : i32
    %c0_i32_1 = arith.constant 0 : i32
    return %c0_i32, %c0_i32_0 : i32, i32
  }
  func.func @transform_7(%arg0: i32, %arg1: i32) -> (i32, i32, i32) {
    %c0_i32 = arith.constant 0 : i32
    %c0_i32_0 = arith.constant 0 : i32
    return %arg0, %arg1, %c0_i32 : i32, i32, i32
  }
}

</mosaic_0001>

<bundles_post_ra>
// kernel: graphsage_forward.1
= control target key start
LH: loop header
LB: loop body
LE: loop exit
PB: predicated region body
PF: predicated region fallthrough
CT: control target
= control target key end

     0   :  { %s3858_s0 = inlined_call_operand.hbm [shape: bf16[2,64,128], index: 0, kind: input, shape index: {}, may-alias: {0,2}]   ;;  %s3859_s1 = inlined_call_operand.hbm [shape: s32[2,64,9], index: 1, kind: input, shape index: {}]   ;;  %s3860_s2 = inlined_call_operand.hbm [shape: bf16[2,64,128], index: 2, kind: input, shape index: {}, may-alias: {0,2}]   ;;  %s3861_s3 = inlined_call_operand.hbm [shape: bf16[128,128], index: 3, kind: input, shape index: {}]   ;;  %s3862_s4 = inlined_call_operand.hbm [shape: f32[1,128], index: 4, kind: input, shape index: {}]   ;;  %s3863_s5 = inlined_call_operand.hbm [shape: bf16[256,128], index: 5, kind: input, shape index: {}]   ;;  %s3864_s6 = inlined_call_operand.hbm [shape: f32[1,128], index: 6, kind: input, shape index: {}]   ;;  %s3865_s7 = inlined_call_operand.hbm [shape: f32[2,64,128], index: 7, kind: output, shape index: {}]  }
   0x1   :  { %3891 = sst [smem:[#allocation28_spill]] %s3859_s1 }
   0x2   :  { %3892 = sst [smem:[#allocation29_spill]] %s3861_s3 }
   0x3   :  { %3893 = sst [smem:[#allocation30_spill]] %s3863_s5 }
   0x4   :  { %3894 = sst [smem:[#allocation31_spill]] %s3865_s7 }
   0x5   :  { %12 = vsyncpa [#allocation4], 0 }
   0x6   :  { %14 = vsyncpa [#allocation4 + $0x1], 0 }
   0x7   :  { %15 = vsyncpa [#allocation7], 0 }
   0x8   :  { %17 = vsyncpa [#allocation7 + $0x1], 0 }
   0x9   :  { %18 = vsyncpa [#allocation10], 0 }
   0xa   :  { %19 = vsyncpa [#allocation13], 0 }
   0xb   :  { %20 = vsyncpa [#allocation5], 0 }
   0xc   :  { %22 = vsyncpa [#allocation5 + $0x1], 0  ;;  %s2986_s24 = smov 0   ;;  %s2988_s25 = smov 0  }
   0xd   :  { %s2990_s26 = smov 0   ;;  %s2992_s27 = smov 0  }
   0xe   :  { %s2994_s28 = smov 0   ;;  %s2996_s29 = smov 0  }
   0xf LB: > { %3895 = sst [smem:[#allocation21_spill]] %s2900_s24  ;;  %s3017_s30 = sadd.s32 4294967295, %s2920_s29   ;;  %s2920_s29 = sphi %s2996_s29, %s28_s29   ;;  %s2916_s28 = sphi %s2994_s28, %s3951_s28   ;;  %s2912_s27 = sphi %s2992_s27, %s3950_s27   ;;  %s2908_s26 = sphi %s2990_s26, %s3946_s26   ;;  %s2904_s25 = sphi %s2988_s25, %s3949_s25   ;;  %s2900_s24 = sphi %s2986_s24, %s3948_s24  }
  0x10   : > { %3896 = sst [smem:[#allocation22_spill]] %s2908_s26  ;;  %s2058_s8 = sadd.s32 4294967294, %s2920_s29  }
  0x11   : > { %3897 = sst [smem:[#allocation23_spill]] %s2920_s29  ;;  %p62_p0 = scmp.ne.s32.totalorder %s2904_s25, %s2900_s24 }
  0x12   : > { %p3866_p1 = scmp.eq.s32.totalorder %s3017_s30, 0  ;;  %p232_p3 = scmp.eq.s32.totalorder %s2058_s8, 1 }
  0x13   : > { %p2059_p5 = scmp.ge.s32.totalorder %s2920_s29, 1  ;;  %p239_p7 = scmp.lt.s32.totalorder %s2920_s29, 3 }
  0x14   : > { %p3026_p4 = por %p3866_p1, %p62_p0  ;;  %p3031_p6 = por %p232_p3, %p62_p0 }
  0x15   : > { %p3036_p8 = pnand %p2059_p5, %p239_p7  ;;  %s2922_s12 = smov [#allocation9]  }
  0x16   : > { %s3898_s9 = scalar_select %p3026_p4, 1, 0 }
  0x17   : > { %s3899_s10 = scalar_select %p3031_p6, 1, 0 }
  0x18   : > { %s3901_s11 = scalar_select %p3036_p8, 1, 0 }
  0x19   : > { %3900 = sst [smem:[#allocation24_spill]] %s3899_s10  ;;  %s251_s13 = sshll.u32 %s2922_s12, 4  ;;  %s3040_s13 = int_to_ptr.vmem [resolvable:$true] %s251_s13 }
  0x1a   : > { %p2462_p9 = pneg %p3036_p8  ;;  %s2923_s15 = smov [#allocation12]  }
  0x1b   : > { %s275_s16 = sshll.u32 %s2923_s15, 4  ;;  %s3903_s3 = sld [smem:[#allocation29_spill]]  ;;  %s3051_s16 = int_to_ptr.vmem [resolvable:$true] %s275_s16 }
  0x1c   : > { %p3047_p11 = pnand %p2462_p9, %p3866_p1 }
  0x1e   : > { %s3902_s14 = scalar_select %p3047_p11, 1, 0 }
  0x1f   : > { %p3061_p13 = pneg %p3047_p11 }
  0x21   : > { %s2624_s19 = scalar_lea.hbm %s3903_s3, 1024 }
  0x22   : > { %p2625_p12 = scmp.ne.s32.totalorder %s3903_s3, %s2624_s19  ;;  %p2631_p5 = scmp.lt.u32.totalorder %s2624_s19, %s3903_s3 }
  0x23   : > { %s3904_s22 = scalar_select %p3061_p13, 1, 0 }
  0x24   : > { %p2627_p0 = pnand %p3061_p13, %p2625_p12 }
  0x26   : > { %p2628_p3 = pneg %p2627_p0 }
  0x28   : > { %p2633_p7 = pnand %p2631_p5, %p2628_p3 }
  0x2a   : > { %2636 = shalt.err (!%p2633_p7)
}
  0x2b   : > { %s2637_s12 = scalar_lea.vmem %s3040_s13, 1024  ;;  %p2645_p2 = scmp.lt.s32.totalorder %s3040_s13, %s3040_s13 }
  0x2c   : > { %p2638_p9 = scmp.ne.s32.totalorder %s3040_s13, %s2637_s12  ;;  %p2646_p6 = scmp.lt.s32.totalorder %s2637_s12, %s2637_s12 }
  0x2e   : > { %p2640_p10 = pnand %p2638_p9, %p3061_p13  ;;  %p2647_p12 = por %p2646_p6, %p2645_p2 }
  0x30   : > { %p2641_p1 = pneg %p2640_p10 }
  0x32   : > { %p2648_p0 = pnand %p2647_p12, %p2641_p1 }
  0x34   : > { %2651 = shalt.err (!%p2648_p0)
}
  0x35   : > { %s3869_s15 = smov 64   ;;  %s3871_s17 = smov 4  }
  0x36   : > { %2465 = dma.hbm_to_vmem [thread:$0]  (!%p3047_p11), %s3903_s3, 1024, %s3040_s13, [#allocation10], %s3869_s15, %s3869_s15, %s3871_s17  }
  0x37   : > { %s3905_s5 = sld [smem:[#allocation30_spill]] }
  0x3d   : > { %s2652_s23 = scalar_lea.hbm %s3905_s5, 2048 }
  0x3e   : > { %p2653_p1 = scmp.ne.s32.totalorder %s3905_s5, %s2652_s23  ;;  %p2659_p10 = scmp.lt.u32.totalorder %s2652_s23, %s3905_s5 }
  0x40   : > { %p2655_p2 = pnand %p2653_p1, %p3061_p13 }
  0x42   : > { %p2656_p6 = pneg %p2655_p2 }
  0x44   : > { %p2661_p3 = pnand %p2659_p10, %p2656_p6 }
  0x46   : > { %2664 = shalt.err (!%p2661_p3)
}
  0x47   : > { %s2665_s13 = scalar_lea.vmem %s3051_s16, 2048  ;;  %p2673_p12 = scmp.lt.s32.totalorder %s3051_s16, %s3051_s16 }
  0x48   : > { %p2666_p5 = scmp.ne.s32.totalorder %s3051_s16, %s2665_s13  ;;  %p2674_p0 = scmp.lt.s32.totalorder %s2665_s13, %s2665_s13 }
  0x4a   : > { %p2668_p7 = pnand %p2666_p5, %p3061_p13  ;;  %p2675_p1 = por %p2674_p0, %p2673_p12 }
  0x4c   : > { %p2669_p9 = pneg %p2668_p7 }
  0x4e   : > { %p2676_p2 = pnand %p2675_p1, %p2669_p9 }
  0x50   : > { %2679 = shalt.err (!%p2676_p2)
}
  0x51   : > { %2471 = dma.hbm_to_vmem [thread:$0]  (!%p3047_p11), %s3905_s5, 2048, %s3051_s16, [#allocation13], %s3869_s15, %s3869_s15, %s3871_s17  }
  0x52   : > { %s40_s18 = sadd.s32 1, %s2916_s28  ;;  %s49_s19 = sadd.s32 1, %s2908_s26 }
  0x53   : > { %p42_p6 = scmp.ge.s32.totalorder %s40_s18, 2  ;;  %p56_p10 = scmp.ne.s32.totalorder %s2908_s26, %s2904_s25 }
  0x54   : > { %p57_p3 = scmp.eq.s32.totalorder %s2920_s29, 0  ;;  %p2493_p5 = scmp.lt.s32.totalorder %s2920_s29, 2 }
  0x55   : > { %s3953_s18 = smov (%p42_p6, %s40_s18), 0  ;;  %p3907_p9 = scmp.eq.s32.totalorder %s3017_s30, 1 }
  0x56   : > { %3906 = sst [smem:[#allocation25_spill]] %s3953_s18  ;;  %p58_p7 = por %p57_p3, %p56_p10 }
  0x57   : > { %p3121_p12 = por %p3907_p9, %p56_p10  ;;  %s44_s21 = ssub.s32 %s2916_s28, %s3953_s18 }
  0x58   : > { %s3128_s23 = sand.u32 1, %s2908_s26   ;;  %p47_p0 = scmp.eq.s32.totalorder %s44_s21, 0 }
  0x59   : > { %s3908_s20 = scalar_select %p3121_p12, 1, 0 }
  0x5a   : > { %p3130_p1 = pnand %p2493_p5, %p58_p7  ;;  %s323_s8 = sand.u32 1, %s2920_s29  }
  0x5b   : > { %3909 = sst [smem:[#allocation26_spill]] %s3908_s20  ;;  %s2068_s12 = sshll.u32 %s3128_s23, 6 }
  0x5c   : > { %s3910_s16 = scalar_select %p3130_p1, 1, 0 }
  0x5d   : > { %s3137_s13 = scalar_select %p47_p0, %s2908_s26, %s49_s19  }
  0x5e   : > { %s2231_s24 = sshll.u32 %s2916_s28, 10  ;;  %s3912_s1 = sld [smem:[#allocation28_spill]] }
  0x5f   : > { %3911 = sst [smem:[#allocation27_spill]] %s3137_s13  ;;  %s327_s21 = scalar_lea.vmem [#allocation6], %s2068_s12 }
  0x60   : > { %s336_s3 = sshll.u32 %s327_s21, 4  ;;  %s3147_s5 = scalar_lea.sflag [#allocation7], %s323_s8  ;;  %s3145_s3 = int_to_ptr.vmem [resolvable:$true] %s336_s3 }
  0x61   : > { %p3153_p6 = pneg %p3130_p1 }
  0x63   : > { %s3913_s19 = scalar_select %p3153_p6, 1, 0 }
  0x64   : > { %s3143_s17 = scalar_lea.hbm %s3912_s1, %s2231_s24  ;;  %s2685_s12 = scalar_lea.hbm %s3912_s1, 2048 }
  0x65   : > { %s2680_s18 = scalar_lea.hbm %s3143_s17, 1024  ;;  %p2686_p5 = scmp.lt.u32.totalorder %s3143_s17, %s3912_s1 }
  0x66   : > { %p2681_p2 = scmp.ne.s32.totalorder %s3143_s17, %s2680_s18  ;;  %p2687_p7 = scmp.lt.u32.totalorder %s2685_s12, %s2680_s18 }
  0x67   : > { %p2689_p0 = scmp.lt.u32.totalorder %s2680_s18, %s3143_s17 }
  0x68   : > { %p2683_p10 = pnand %p3153_p6, %p2681_p2  ;;  %p2688_p9 = por %p2687_p7, %p2686_p5 }
  0x6a   : > { %p2684_p3 = pneg %p2683_p10  ;;  %p2690_p12 = por %p2689_p0, %p2688_p9 }
  0x6c   : > { %p2691_p4 = pnand %p2690_p12, %p2684_p3 }
  0x6e   : > { %2694 = shalt.err (!%p2691_p4)
}
  0x6f   : > { %s2695_s8 = scalar_lea.vmem %s3145_s3, 1024  ;;  %s2926_s15 = smov [#allocation6]  }
  0x70   : > { %p2696_p2 = scmp.ne.s32.totalorder %s3145_s3, %s2695_s8  ;;  %s2700_s24 = sshll.u32 %s2926_s15, 4  ;;  %s2701_s24 = int_to_ptr.vmem [resolvable:$false] %s2700_s24 }
  0x71   : > { %s2702_s10 = scalar_lea.vmem %s2701_s24, 2048  ;;  %p2703_p11 = scmp.lt.s32.totalorder %s3145_s3, %s2701_s24 }
  0x72   : > { %p2698_p10 = pnand %p2696_p2, %p3153_p6  ;;  %p2704_p13 = scmp.lt.s32.totalorder %s2702_s10, %s2695_s8 }
  0x74   : > { %p2699_p8 = pneg %p2698_p10  ;;  %p2705_p5 = por %p2704_p13, %p2703_p11 }
  0x76   : > { %p2706_p7 = pnand %p2705_p5, %p2699_p8 }
  0x78   : > { %2709 = shalt.err (!%p2706_p7)
}
  0x79   : > { %s2927_s18 = smov 128   ;;  %s2928_s12 = smov 8  }
  0x7a   : > { %2481 = dma.hbm_to_vmem [thread:$0]  (!%p3130_p1), %s3143_s17, 1024, %s3145_s3, %s3147_s5, %s2927_s18, %s2927_s18, %s2928_s12  }
  0x7b   : > { %s2929_s21 = smov [#allocation11]   ;;  %s2930_s15 = smov [#allocation14]  }
  0x7c   : > { %s265_s1 = sshll.u32 %s2929_s21, 4  ;;  %s289_s13 = sshll.u32 %s2930_s15, 4  ;;  %s266_s1 = int_to_ptr.vmem [resolvable:$true] %s265_s1  ;;  %s290_s13 = int_to_ptr.vmem [resolvable:$true] %s289_s13 }
  0x7d   : > { %s2710_s8 = scalar_lea.hbm %s3862_s4, 16  ;;  %p3914_p8 = scmp.ne.s32.totalorder %s3904_s22, 0 }
  0x7e   : > { %p2711_p4 = scmp.ne.s32.totalorder %s3862_s4, %s2710_s8  ;;  %p2717_p12 = scmp.lt.u32.totalorder %s2710_s8, %s3862_s4 }
  0x80   : > { %p2713_p11 = pnand %p2711_p4, %p3914_p8 }
  0x82   : > { %p2714_p13 = pneg %p2713_p11 }
  0x84   : > { %p2719_p3 = pnand %p2717_p12, %p2714_p13 }
  0x86   : > { %2722 = shalt.err (!%p2719_p3)
}
  0x87   : > { %s2723_s3 = scalar_lea.vmem %s266_s1, 16  ;;  %s2730_s26 = scalar_lea.vmem %s266_s1, 32 }
  0x88   : > { %p2724_p9 = scmp.ne.s32.totalorder %s266_s1, %s2723_s3  ;;  %p2731_p10 = scmp.lt.s32.totalorder %s266_s1, %s266_s1 }
  0x89   : > { %p2732_p5 = scmp.lt.s32.totalorder %s2730_s26, %s2723_s3 }
  0x8a   : > { %p2726_p0 = pnand %p2724_p9, %p3914_p8 }
  0x8b   : > { %p2733_p7 = por %p2732_p5, %p2731_p10 }
  0x8c   : > { %p2727_p2 = pneg %p2726_p0 }
  0x8e   : > { %p2734_p1 = pnand %p2733_p7, %p2727_p2 }
  0x90   : > { %2737 = shalt.err (!%p2734_p1)
}
  0x91   : > { %p3915_p4 = scmp.ne.s32.totalorder %s3902_s14, 0  ;;  %s2738_s18 = scalar_lea.hbm %s3864_s6, 16 }
  0x92   : > { %p2739_p11 = scmp.ne.s32.totalorder %s3864_s6, %s2738_s18  ;;  %p2745_p1 = scmp.lt.u32.totalorder %s2738_s18, %s3864_s6 }
  0x93   : > { %2468 = dma.hbm_to_vmem [thread:$0]  (!%p3915_p4), %s3862_s4, 16, %s266_s1, [#allocation10]  }
  0x94   : > { %p2741_p13 = pnand %p2739_p11, %p3914_p8 }
  0x96   : > { %p2742_p12 = pneg %p2741_p13 }
  0x98   : > { %p2747_p3 = pnand %p2745_p1, %p2742_p12 }
  0x9a   : > { %2750 = shalt.err (!%p2747_p3)
}
  0x9b   : > { %s2751_s8 = scalar_lea.vmem %s290_s13, 16  ;;  %s2758_s1 = scalar_lea.vmem %s290_s13, 32 }
  0x9c   : > { %p2752_p9 = scmp.ne.s32.totalorder %s290_s13, %s2751_s8  ;;  %p2759_p10 = scmp.lt.s32.totalorder %s290_s13, %s290_s13 }
  0x9d   : > { %p2760_p5 = scmp.lt.s32.totalorder %s2758_s1, %s2751_s8 }
  0x9e   : > { %p2754_p0 = pnand %p2752_p9, %p3914_p8 }
  0x9f   : > { %p2761_p7 = por %p2760_p5, %p2759_p10 }
  0xa0   : > { %p2755_p2 = pneg %p2754_p0 }
  0xa2   : > { %p2762_p6 = pnand %p2761_p7, %p2755_p2 }
  0xa4   : > { %2765 = shalt.err (!%p2762_p6)
}
  0xa5   : > { %2474 = dma.hbm_to_vmem [thread:$0]  (!%p3915_p4), %s3864_s6, 16, %s290_s13, [#allocation13]  }
  0xa6   : > { %s2065_s22 = sshll.u32 %s3128_s23, 5  ;;  %s2230_s26 = sshll.u32 %s2916_s28, 9 }
  0xa7   : > { %s3218_s7 = scalar_lea.hbm %s3858_s0, %s2230_s26  ;;  %s304_s14 = scalar_lea.vmem [#allocation3], %s2065_s22 }
  0xa8   : > { %s313_s20 = sshll.u32 %s304_s14, 4  ;;  %s3227_s13 = scalar_lea.hbm %s3860_s2, %s2230_s26  ;;  %s3222_s20 = int_to_ptr.vmem [resolvable:$true] %s313_s20 }
  0xa9   : > { %s301_s21 = scalar_lea.sflag [#allocation4], %s3128_s23  ;;  %s2766_s15 = scalar_lea.hbm %s3218_s7, 512 }
  0xaa   : > { %p2767_p6 = scmp.ne.s32.totalorder %s3218_s7, %s2766_s15  ;;  %p3916_p8 = scmp.ne.s32.totalorder %s3913_s19, 0 }
  0xab   : > { %s2771_s1 = scalar_lea.hbm %s3858_s0, 1024  ;;  %p2772_p13 = scmp.lt.u32.totalorder %s3218_s7, %s3858_s0 }
  0xac   : > { %p2769_p4 = pnand %p2767_p6, %p3916_p8  ;;  %p2773_p12 = scmp.lt.u32.totalorder %s2771_s1, %s2766_s15 }
  0xad   : > { %p2775_p3 = scmp.lt.u32.totalorder %s2766_s15, %s3218_s7 }
  0xae   : > { %p2770_p11 = pneg %p2769_p4  ;;  %p2774_p1 = por %p2773_p12, %p2772_p13 }
  0xb0   : > { %p2776_p9 = por %p2775_p3, %p2774_p1 }
  0xb2   : > { %p2777_p0 = pnand %p2776_p9, %p2770_p11 }
  0xb4   : > { %2780 = shalt.err (!%p2777_p0)
}
  0xb5   : > { %s2781_s26 = scalar_lea.vmem %s3222_s20, 512  ;;  %s2931_s29 = smov [#allocation3]  }
  0xb6   : > { %p2782_p2 = scmp.ne.s32.totalorder %s3222_s20, %s2781_s26  ;;  %s2786_s17 = sshll.u32 %s2931_s29, 4  ;;  %s2787_s17 = int_to_ptr.vmem [resolvable:$false] %s2786_s17 }
  0xb7   : > { %s2788_s14 = scalar_lea.vmem %s2787_s17, 1024  ;;  %p2789_p7 = scmp.lt.s32.totalorder %s3222_s20, %s2787_s17 }
  0xb8   : > { %p2784_p10 = pnand %p2782_p2, %p3916_p8  ;;  %p2790_p6 = scmp.lt.s32.totalorder %s2788_s14, %s2781_s26 }
  0xba   : > { %p2785_p5 = pneg %p2784_p10  ;;  %p2791_p4 = por %p2790_p6, %p2789_p7 }
  0xbc   : > { %p2792_p13 = pnand %p2791_p4, %p2785_p5 }
  0xbe   : > { %2795 = shalt.err (!%p2792_p13)
}
  0xbf   : > { %p3917_p11 = scmp.ne.s32.totalorder %s3910_s16, 0  ;;  %s3918_s18 = smov 4  }
  0xc0   : > { %s3919_s12 = smov 64   ;;  %s350_s15 = scalar_lea.vmem [#allocation8], %s2065_s22 }
  0xc1   : > { %2478 = dma.hbm_to_vmem [thread:$0]  (!%p3917_p11), %s3218_s7, 512, %s3222_s20, %s301_s21, %s3919_s12, %s3919_s12, %s3918_s18  }
  0xc2   : > { %s357_s24 = sshll.u32 %s350_s15, 4  ;;  %s2796_s8 = scalar_lea.hbm %s3227_s13, 512  ;;  %s3258_s24 = int_to_ptr.vmem [resolvable:$true] %s357_s24 }
  0xc3   : > { %p2797_p12 = scmp.ne.s32.totalorder %s3227_s13, %s2796_s8  ;;  %s2801_s3 = scalar_lea.hbm %s3860_s2, 1024 }
  0xc4   : > { %p2802_p9 = scmp.lt.u32.totalorder %s3227_s13, %s3860_s2  ;;  %p2803_p0 = scmp.lt.u32.totalorder %s2801_s3, %s2796_s8 }
  0xc5   : > { %p2799_p1 = pnand %p2797_p12, %p3916_p8  ;;  %p2805_p10 = scmp.lt.u32.totalorder %s2796_s8, %s3227_s13 }
  0xc6   : > { %p2804_p2 = por %p2803_p0, %p2802_p9 }
  0xc7   : > { %p2800_p3 = pneg %p2799_p1 }
  0xc8   : > { %p2806_p5 = por %p2805_p10, %p2804_p2 }
  0xca   : > { %p2807_p7 = pnand %p2806_p5, %p2800_p3 }
  0xcc   : > { %2810 = shalt.err (!%p2807_p7)
}
  0xcd   : > { %s2811_s23 = scalar_lea.vmem %s3258_s24, 512  ;;  %s2932_s22 = smov [#allocation8]  }
  0xce   : > { %p2812_p6 = scmp.ne.s32.totalorder %s3258_s24, %s2811_s23  ;;  %s2816_s7 = sshll.u32 %s2932_s22, 4  ;;  %s2817_s7 = int_to_ptr.vmem [resolvable:$false] %s2816_s7 }
  0xcf   : > { %s2818_s20 = scalar_lea.vmem %s2817_s7, 1024  ;;  %p2819_p12 = scmp.lt.s32.totalorder %s3258_s24, %s2817_s7 }
  0xd0   : > { %p2814_p4 = pnand %p2812_p6, %p3916_p8  ;;  %p2820_p1 = scmp.lt.s32.totalorder %s2818_s20, %s2811_s23 }
  0xd2   : > { %p2815_p13 = pneg %p2814_p4  ;;  %p2821_p9 = por %p2820_p1, %p2819_p12 }
  0xd4   : > { %p2822_p0 = pnand %p2821_p9, %p2815_p13 }
  0xd6   : > { %2825 = shalt.err (!%p2822_p0)
}
  0xd7   : > { %2484 = dma.hbm_to_vmem [thread:$0]  (!%p3917_p11), %s3227_s13, 512, %s3258_s24, %s3147_s5, %s3919_s12, %s3919_s12, %s3918_s18  }
  0xd8   : > { %p3920_p8 = scmp.ne.s32.totalorder %s3901_s11, 0 }
  0xd9   : > { %s3288_s19 = sand.u32 (!%p3920_p8), 1, %s2904_s25   ;;  %p3921_p3 = scmp.ne.s32.totalorder (!%p3920_p8), %s3898_s9, 0 }
  0xda   : > { %369 = sbr.rel (%p3920_p8) target bundleno = 1075 (0x433), region = 48  ;;  %s2075_s21 = sshll.u32 (!%p3920_p8), %s3288_s19, 5 }
  0xdb   : > { %s372_s17 = scalar_lea.sflag (!%p3920_p8), [#allocation4], %s3288_s19  ;;  %s3292_s14 = scalar_lea.vmem (!%p3920_p8), [#allocation3], %s2075_s21 }
  0xe1   : > { %2879 = dma.done.wait (%p3921_p3), %s372_s17, 512  }
  0xe2   : > { %2881 = vsyncadd (%p3921_p3), %s372_s17, 4294966784  ;;  %s380_s5 = sand.u32 1, %s3017_s30   ;;  %s2076_s11 = sshll.u32 %s3288_s19, 6 }
  0xe3   : > { %s381_s16 = scalar_lea.sflag [#allocation7], %s380_s5  ;;  %s3302_s13 = scalar_lea.vmem [#allocation6], %s2076_s11 }
  0xe4   : > { %2883 = dma.done.wait (%p3921_p3), %s381_s16, 1536  }
  0xe5   : > { %2885 = vsyncadd (%p3921_p3), %s381_s16, 4294965760  ;;  %s3308_s18 = scalar_lea.vmem [#allocation8], %s2075_s21  ;;  %p3922_p11 = scmp.eq.s32.totalorder %s3017_s30, 0 }
  0xe7   : > { %2887 = dma.done.wait (%p3922_p11), [#allocation10], 1040   ;;  %p3923_p2 = pmov %p3922_p11 }
  0xe9   : > { %2889 = vsyncadd (%p3923_p2), [#allocation10], 4294966256  ;;  %p3924_p10 = pmov %p3923_p2 }
  0xea   : > { %p3925_p5 = pmov %p3923_p2 }
  0xeb   : > { %2891 = dma.done.wait (%p3924_p10), [#allocation13], 2064  }
  0xec   : > { %2893 = vsyncadd (%p3925_p5), [#allocation13], 4294965232  ;;  %v2933_v0 = vmov 2   ;;  %v2592_v1 = vld [vmem:[#allocation9] sm:$0xff]   ;;  %v2593_v2 = vld [vmem:[#allocation9 + $0x8] sm:$0xff]   ;;  %v2934_v12 = vmov 3   ;;  %v662_v29 = vlaneseq }
  0xed   : > { %2568 = vset.pattern.permute.xlu1 %v2933_v0  ;;  %2567 = vset.pattern.permute.xlu0 %v2933_v0  ;;  %v2594_v3 = vld [vmem:[#allocation9 + $0x10] sm:$0xff]   ;;  %v3325_v5 = vld [vmem:[%s3302_s13 + $0x38] sm:$0xff]  ;;  %v2600_v7 = vld [vmem:[%s3308_s18] sm:$0xff]   ;;  %v2935_v21 = vmov 4   ;;  %v2936_v23 = vmov 5   ;;  %v2937_v24 = vmov 0  }
  0xee   : > { %2326 = vmatprep.subr.bf16.mxu0 %v2592_v1  ;;  %v3321_v4 = vld [vmem:[%s3302_s13 + $0x30] sm:$0xff]  ;;  %v2595_v6 = vld [vmem:[#allocation9 + $0x18] sm:$0xff]   ;;  %v2596_v8 = vld [vmem:[#allocation9 + $0x20] sm:$0xff]   ;;  %2342 = vmatprep.mubr.bf16.mxu0 %v2600_v7  ;;  %v2938_v25 = vmov 6   ;;  %v2939_v26 = vmov 1   ;;  %v2940_v27 = vmov 7  }
  0xef   : > { %2327 = vmatpush3.bf16.msra.mxu0 %v2592_v1  ;;  %787 = vperm.xlu1 %2568, %v3321_v4   ;;  %v3330_v9 = vld [vmem:[%s3302_s13 + $0x8] sm:$0xff]  ;;  %v3333_v10 = vld [vmem:[%s3302_s13 + $0x20] sm:$0xff]  ;;  %v3341_v14 = vld [vmem:[%s3302_s13 + $0x10] sm:$0xff]  ;;  %v2941_v28 = vmov 8   ;;  %v3407_v30 = vand.u32 127, %v662_v29  ;;  %v2942_v32 = vmov 0.0  }
  0xf0   : > { %2328 = vmatprep.subr.bf16.mxu0 %v2593_v2  ;;  %781 = vperm.xlu0 %2567, %v3333_v10   ;;  %v2597_v11 = vld [vmem:[#allocation9 + $0x28] sm:$0xff]   ;;  %v2598_v15 = vld [vmem:[#allocation9 + $0x30] sm:$0xff]   ;;  %v3346_v16 = vld [vmem:[%s3302_s13] sm:$0xff]  ;;  %vm1132_vm5 = vcmask 523264   ;;  %s3792_s30 = scalar_lea.vmem [#allocation15], %s2076_s11  ;;  %s3937_s9 = sld [smem:[#allocation26_spill]] }
  0xf1   : > { %v3337_v13 = vld [vmem:[%s3302_s13 + $0x28] sm:$0xff]  ;;  %v3349_v17 = vld [vmem:[%s3302_s13 + $0x18] sm:$0xff]  ;;  %v2602_v20 = vld [vmem:[%s3308_s18 + $0x10] sm:$0xff]   ;;  %s1886_s12 = sshll.u32 %s3792_s30, 4  ;;  %s2233_s15 = sshll.u32 %s2912_s27, 10  ;;  %s3802_s12 = int_to_ptr.vmem [resolvable:$true] %s1886_s12 }
  0xf2   : > { %v2599_v18 = vld [vmem:[#allocation9 + $0x38] sm:$0xff]   ;;  %v2601_v19 = vld [vmem:[%s3308_s18 + $0x8] sm:$0xff]   ;;  %s3938_s1 = sld [smem:[#allocation31_spill]]  ;;  %s1871_s3 = scalar_lea.sflag [#allocation5], %s3288_s19 }
  0xf3   : > { %2329 = vmatpush3.bf16.msra.mxu0 %v2593_v2  ;;  %790 = vperm.xlu1 %2568, %v3325_v5   ;;  %v2603_v22 = vld [vmem:[%s3308_s18 + $0x18] sm:$0xff]   ;;  %s2826_s26 = scalar_lea.vmem %s3802_s12, 1024  ;;  %s2943_s27 = smov [#allocation15]  }
  0xf4   : > { %2330 = vmatprep.subr.bf16.mxu0 %v2594_v3  ;;  %784 = vperm.xlu0 %2567, %v3337_v13   ;;  %p2827_p7 = scmp.ne.s32.totalorder %s3802_s12, %s2826_s26  ;;  %s2830_s29 = sshll.u32 %s2943_s27, 4  ;;  %s2831_s29 = int_to_ptr.vmem [resolvable:$false] %s2830_s29 }
  0xf5   : > { %s2832_s23 = scalar_lea.vmem %s2831_s29, 2048  ;;  %p2833_p12 = scmp.lt.s32.totalorder %s3802_s12, %s2831_s29 }
  0xf6   : > { %p3939_p6 = scmp.ne.s32.totalorder %s3937_s9, 0  ;;  %p2834_p1 = scmp.lt.s32.totalorder %s2832_s23, %s2826_s26 }
  0xf7   : > { %2331 = vmatpush3.bf16.msra.mxu0 %v2594_v3  ;;  %2570 = vset.pattern.permute.xlu1 %v2934_v12 }
  0xf8   : > { %2332 = vmatprep.subr.bf16.mxu0 %v2595_v6  ;;  %824 = vperm.xlu1 %2570, %v3330_v9   ;;  %s3807_s10 = scalar_lea.hbm %s3938_s1, %s2233_s15  ;;  %p2828_p4 = pnand %p2827_p7, %p3939_p6 }
  0xf9   : > { %2569 = vset.pattern.permute.xlu0 %v2934_v12  ;;  %p2835_p9 = por %p2834_p1, %p2833_p12 }
  0xfa   : > { %821 = vperm.xlu0 %2569, %v3346_v16   ;;  %p2829_p13 = pneg %p2828_p4 }
  0xfb   : > { %2333 = vmatpush3.bf16.msra.mxu0 %v2595_v6 }
  0xfc   : > { %2334 = vmatprep.subr.bf16.mxu0 %v2596_v8  ;;  %827 = vperm.xlu1 %2570, %v3341_v14   ;;  %p2836_p0 = pnand %p2835_p9, %p2829_p13 }
  0xfe   : > { %830 = vperm.xlu0 %2569, %v3349_v17  }
  0xff   : > { %2335 = vmatpush3.bf16.msra.mxu0 %v2596_v8 }
 0x100   : > { %2336 = vmatprep.subr.bf16.mxu0 %v2597_v11  ;;  %833 = vperm.xlu1 %2570, %v3333_v10  }
 0x102   : > { %836 = vperm.xlu0 %2569, %v3337_v13  }
 0x103   : > { %2337 = vmatpush3.bf16.msra.mxu0 %v2597_v11 }
 0x104   : > { %2338 = vmatprep.subr.bf16.mxu0 %v2598_v15  ;;  %839 = vperm.xlu1 %2570, %v3321_v4  }
 0x106   : > { %842 = vperm.xlu0 %2569, %v3325_v5  }
 0x107   : > { %2339 = vmatpush3.bf16.msra.mxu0 %v2598_v15 }
 0x108   : > { %2340 = vmatprep.subr.bf16.mxu0 %v2599_v18  ;;  %2571 = vset.pattern.permute.xlu1 %v2935_v21 }
 0x109   : > { %873 = vperm.xlu1 %2571, %v3346_v16  }
 0x10a   : > { %2572 = vset.pattern.permute.xlu0 %v2935_v21 }
 0x10b   : > { %2341 = vmatpush3.bf16.msra.mxu0 %v2599_v18  ;;  %876 = vperm.xlu0 %2572, %v3330_v9  }
 0x10d   : > { %879 = vperm.xlu1 %2571, %v3341_v14  }
 0x10e   : > { %2343 = vmatmul.mubr.bf16.vlgmr.msra.gmra.mrb[0].mxu0 %v2601_v19 }
 0x10f   : > { %2346 = vmatprep.mubr.bf16.mxu0 %v2602_v20  ;;  %885 = vperm.xlu0 %2572, %v3333_v10  }
 0x111   : > { %882 = vperm.xlu1 %2571, %v3349_v17  }
 0x113   : > { %891 = vperm.xlu0 %2572, %v3321_v4  }
 0x115   : > { %888 = vperm.xlu1 %2571, %v3337_v13  }
 0x116   : > { %2347 = vmatmul.mubr.bf16.gmra.mrb[4].mxu0 %v2603_v22 }
 0x117   : > { %2573 = vset.pattern.permute.xlu0 %v2936_v23 }
 0x118   : > { %925 = vperm.xlu0 %2573, %v3346_v16  }
 0x119   : > { %894 = vperm.xlu1 %2571, %v3325_v5  }
 0x11c   : > { %934 = vperm.xlu0 %2573, %v3349_v17  }
 0x11d   : > { %2574 = vset.pattern.permute.xlu1 %v2936_v23 }
 0x11e   : > { %928 = vperm.xlu1 %2574, %v3330_v9  }
 0x120   : > { %937 = vperm.xlu0 %2573, %v3333_v10  }
 0x122   : > { %931 = vperm.xlu1 %2574, %v3341_v14  }
 0x124   : > { %946 = vperm.xlu0 %2573, %v3325_v5  }
 0x126   : > { %2575 = vset.pattern.permute.xlu1 %v2937_v24 }
 0x127   : > { %665 = vperm.xlu1 %2575, %v3346_v16  }
 0x128   : > { %2577 = vset.pattern.permute.xlu0 %v2937_v24 }
 0x129   : > { %668 = vperm.xlu0 %2577, %v3330_v9  }
 0x12b   : > { %671 = vperm.xlu1 %2575, %v3341_v14  }
 0x12d   : > { %680 = vperm.xlu0 %2577, %v3337_v13  }
 0x12f   : > { %674 = vperm.xlu1 %2575, %v3349_v17  }
 0x131   : > { %2579 = vset.pattern.permute.xlu0 %v2938_v25 }
 0x132   : > { %977 = vperm.xlu0 %2579, %v3346_v16  }
 0x133   : > { %2576 = vset.pattern.permute.xlu1 %v2936_v23 }
 0x134   : > { %940 = vperm.xlu1 %2576, %v3337_v13  }
 0x136   : > { %986 = vperm.xlu0 %2579, %v3349_v17  }
 0x138   : > { %943 = vperm.xlu1 %2576, %v3321_v4  }
 0x13a   : > { %989 = vperm.xlu0 %2579, %v3333_v10  }
 0x13c   : > { %2578 = vset.pattern.permute.xlu1 %v2937_v24 }
 0x13d   : > { %677 = vperm.xlu1 %2578, %v3333_v10  }
 0x13e   : > { %998 = vperm.xlu0 %2579, %v3325_v5  }
 0x141   : > { %683 = vperm.xlu1 %2578, %v3321_v4  }
 0x142   : > { %2583 = vset.pattern.permute.xlu0 %v2939_v26 }
 0x143   : > { %720 = vperm.xlu0 %2583, %v3330_v9  }
 0x145   : > { %686 = vperm.xlu1 %2578, %v3325_v5  }
 0x147   : > { %732 = vperm.xlu0 %2583, %v3337_v13  }
 0x149   : > { %2580 = vset.pattern.permute.xlu1 %v2938_v25 }
 0x14a   : > { %980 = vperm.xlu1 %2580, %v3330_v9  }
 0x14b   : > { %2587 = vset.pattern.permute.xlu0 %v2933_v0 }
 0x14c   : > { %772 = vperm.xlu0 %2587, %v3330_v9  }
 0x14e   : > { %983 = vperm.xlu1 %2580, %v3341_v14  }
 0x150   : > { %2588 = vset.pattern.permute.xlu0 %v2940_v27 }
 0x151   : > { %1029 = vperm.xlu0 %2588, %v3346_v16  }
 0x152   : > { %2581 = vset.pattern.permute.xlu1 %v2939_v26 }
 0x153   : > { %717 = vperm.xlu1 %2581, %v3346_v16  }
 0x155   : > { %1038 = vperm.xlu0 %2588, %v3349_v17  }
 0x157   : > { %723 = vperm.xlu1 %2581, %v3341_v14  }
 0x159   : > { %1041 = vperm.xlu0 %2588, %v3333_v10  }
 0x15b   : > { %726 = vperm.xlu1 %2581, %v3349_v17  }
 0x15d   : > { %1050 = vperm.xlu0 %2588, %v3325_v5  }
 0x15f   : > { %2582 = vset.pattern.permute.xlu1 %v2938_v25 }
 0x160   : > { %992 = vperm.xlu1 %2582, %v3337_v13  }
 0x161   : > { %2591 = vset.pattern.permute.xlu0 %v2941_v28 }
 0x162   : > { %1084 = vperm.xlu0 %2591, %v3330_v9  }
 0x164   : > { %995 = vperm.xlu1 %2582, %v3321_v4  }
 0x166   : > { %1093 = vperm.xlu0 %2591, %v3333_v10  }
 0x168   : > { %2584 = vset.pattern.permute.xlu1 %v2939_v26 }
 0x169   : > { %729 = vperm.xlu1 %2584, %v3333_v10  }
 0x16a   : > { %1099 = vperm.xlu0 %2591, %v3321_v4  }
 0x16d   : > { %735 = vperm.xlu1 %2584, %v3321_v4  }
 0x16e   : > { %v788_v31 = vpop.permute.xlu1 %787 }
 0x16f   : > { %vm798_vm0 = vcmp.eq.s32.totalorder %v3407_v30, %v788_v31  ;;  %v782_v37 = vpop.permute.xlu0 %781 }
 0x170   : > { %v3415_v33 = vsel %vm798_vm0, 1.0, %v2942_v32  ;;  %vm796_vm2 = vcmp.eq.s32.totalorder %v3407_v30, %v782_v37 }
 0x171   : > { %738 = vperm.xlu1 %2584, %v3325_v5   ;;  %v2116_v39 = vsel %vm796_vm2, 1.0, %v2942_v32 }
 0x172   : > { %v791_v34 = vpop.permute.xlu1 %790 }
 0x173   : > { %vm799_vm1 = vcmp.eq.s32.totalorder %v3407_v30, %v791_v34  ;;  %v785_v40 = vpop.permute.xlu0 %784 }
 0x174   : > { %v3419_v35 = vsel %vm799_vm1, 1.0, %v2942_v32  ;;  %vm797_vm3 = vcmp.eq.s32.totalorder %v3407_v30, %v785_v40 }
 0x175   : > { %2585 = vset.pattern.permute.xlu1 %v2940_v27  ;;  %v819_v36 = vpack.c.bf16 %v3419_v35, %v3415_v33  ;;  %v2117_v42 = vsel %vm797_vm3, 1.0, %v2942_v32 }
 0x176   : > { %1032 = vperm.xlu1 %2585, %v3330_v9   ;;  %v818_v43 = vpack.c.bf16 %v2117_v42, %v2116_v39 }
 0x177   : > { %v825_v38 = vpop.permute.xlu1 %824 }
 0x178   : > { %vm845_vm4 = vcmp.eq.s32.totalorder %v3407_v30, %v825_v38  ;;  %2378 = vmatprep.mubr.msk.bf16.mxu1 %vm1132_vm5, %v818_v43 }
 0x179   : > { %v3433_v44 = vsel %vm845_vm4, 1.0, %v2942_v32  ;;  %v822_v45 = vpop.permute.xlu0 %821 }
 0x17a   : > { %1035 = vperm.xlu1 %2585, %v3341_v14   ;;  %vm844_vm7 = vcmp.eq.s32.totalorder %v3407_v30, %v822_v45 }
 0x17b   : > { %v828_v41 = vpop.permute.xlu1 %827  ;;  %v3440_v47 = vsel %vm844_vm7, 1.0, %v2942_v32 }
 0x17c   : > { %vm846_vm6 = vcmp.eq.s32.totalorder %v3407_v30, %v828_v41  ;;  %v868_v48 = vpack.c.bf16 %v3433_v44, %v3440_v47 }
 0x17d   : > { %v3445_v49 = vsel %vm846_vm6, 1.0, %v2942_v32  ;;  %v831_v50 = vpop.permute.xlu0 %830 }
 0x17e   : > { %2586 = vset.pattern.permute.xlu1 %v2933_v0  ;;  %vm847_vm9 = vcmp.eq.s32.totalorder %v3407_v30, %v831_v50 }
 0x17f   : > { %769 = vperm.xlu1 %2586, %v3346_v16   ;;  %v834_v46 = vpop.permute.xlu1 %833  ;;  %v3451_v52 = vsel %vm847_vm9, 1.0, %v2942_v32 }
 0x180   : > { %vm848_vm8 = vcmp.eq.s32.totalorder %v3407_v30, %v834_v46  ;;  %v3926_v47 = vpack.c.bf16 %v3451_v52, %v3445_v49 }
 0x181   : > { %v3456_v54 = vsel %vm848_vm8, 1.0, %v2942_v32  ;;  %v837_v55 = vpop.permute.xlu0 %836 }
 0x182   : > { %vm849_vm11 = vcmp.eq.s32.totalorder %v3407_v30, %v837_v55 }
 0x183   : > { %775 = vperm.xlu1 %2586, %v3341_v14   ;;  %v840_v51 = vpop.permute.xlu1 %839  ;;  %v3462_v57 = vsel %vm849_vm11, 1.0, %v2942_v32 }
 0x184   : > { %vm850_vm10 = vcmp.eq.s32.totalorder %v3407_v30, %v840_v51 }
 0x185   : > { %v3467_v59 = vsel %vm850_vm10, 1.0, %v2942_v32  ;;  %v843_v60 = vpop.permute.xlu0 %842 }
 0x186   : > { %vm851_vm12 = vcmp.eq.s32.totalorder %v3407_v30, %v843_v60 }
 0x187   : > { %778 = vperm.xlu1 %2586, %v3349_v17   ;;  %v3473_v62 = vsel %vm851_vm12, 1.0, %v2942_v32 }
 0x188   : > { %v874_v56 = vpop.permute.xlu1 %873 }
 0x189   : > { %vm896_vm13 = vcmp.eq.s32.totalorder %v3407_v30, %v874_v56 }
 0x18a   : > { %v3480_v0 = vsel %vm896_vm13, 1.0, %v2942_v32  ;;  %v877_v1 = vpop.permute.xlu0 %876 }
 0x18b   : > { %2589 = vset.pattern.permute.xlu1 %v2940_v27  ;;  %vm897_vm15 = vcmp.eq.s32.totalorder %v3407_v30, %v877_v1 }
 0x18c   : > { %v880_v61 = vpop.permute.xlu1 %879  ;;  %1044 = vperm.xlu1 %2589, %v3337_v13   ;;  %v3489_v6 = vsel %vm897_vm15, 1.0, %v2942_v32 }
 0x18d   : > { %vm898_vm14 = vcmp.eq.s32.totalorder %v3407_v30, %v880_v61 }
 0x18e   : > { %v3483_v2 = vsel %vm898_vm14, 1.0, %v2942_v32  ;;  %v886_v10 = vpop.permute.xlu0 %885 }
 0x18f   : > { %vm900_vm1 = vcmp.eq.s32.totalorder %v3407_v30, %v886_v10 }
 0x190   : > { %v883_v3 = vpop.permute.xlu1 %882  ;;  %1047 = vperm.xlu1 %2589, %v3321_v4   ;;  %v3502_v4 = vsel %vm900_vm1, 1.0, %v2942_v32 }
 0x191   : > { %vm899_vm0 = vcmp.eq.s32.totalorder %v3407_v30, %v883_v3 }
 0x192   : > { %v3492_v7 = vsel %vm899_vm0, 1.0, %v2942_v32  ;;  %v892_v18 = vpop.permute.xlu0 %891 }
 0x193   : > { %vm902_vm3 = vcmp.eq.s32.totalorder %v3407_v30, %v892_v18 }
 0x194   : > { %v889_v11 = vpop.permute.xlu1 %888  ;;  %2590 = vset.pattern.permute.xlu1 %v2941_v28  ;;  %v3513_v20 = vsel %vm902_vm3, 1.0, %v2942_v32 }
 0x195   : > { %vm901_vm2 = vcmp.eq.s32.totalorder %v3407_v30, %v889_v11  ;;  %1081 = vperm.xlu1 %2590, %v3346_v16  }
 0x196   : > { %v3506_v12 = vsel %vm901_vm2, 1.0, %v2942_v32 }
 0x197   : > { %v926_v22 = vpop.permute.xlu0 %925 }
 0x198   : > { %v895_v19 = vpop.permute.xlu1 %894  ;;  %vm948_vm6 = vcmp.eq.s32.totalorder %v3407_v30, %v926_v22 }
 0x199   : > { %vm903_vm4 = vcmp.eq.s32.totalorder %v3407_v30, %v895_v19  ;;  %1087 = vperm.xlu1 %2590, %v3341_v14   ;;  %v3525_v24 = vsel %vm948_vm6, 1.0, %v2942_v32 }
 0x19a   : > { %v3517_v21 = vsel %vm903_vm4, 1.0, %v2942_v32 }
 0x19b   : > { %v935_v26 = vpop.permute.xlu0 %934 }
 0x19c   : > { %vm951_vm8 = vcmp.eq.s32.totalorder %v3407_v30, %v935_v26  ;;  %v2083_v26 = vld [vmem:[#allocation11] ss:$0 sm:$0xff] }
 0x19d   : > { %v929_v23 = vpop.permute.xlu1 %928  ;;  %1090 = vperm.xlu1 %2590, %v3349_v17   ;;  %v3536_v17 = vsel %vm951_vm8, 1.0, %v2942_v32 }
 0x19e   : > { %vm949_vm7 = vcmp.eq.s32.totalorder %v3407_v30, %v929_v23 }
 0x19f   : > { %v3528_v25 = vsel %vm949_vm7, 1.0, %v2942_v32  ;;  %v938_v31 = vpop.permute.xlu0 %937 }
 0x1a0   : > { %vm952_vm12 = vcmp.eq.s32.totalorder %v3407_v30, %v938_v31 }
 0x1a1   : > { %v932_v27 = vpop.permute.xlu1 %931  ;;  %1096 = vperm.xlu1 %2590, %v3337_v13   ;;  %v3555_v43 = vsel %vm952_vm12, 1.0, %v2942_v32 }
 0x1a2   : > { %vm950_vm9 = vcmp.eq.s32.totalorder %v3407_v30, %v932_v27 }
 0x1a3   : > { %v3539_v28 = vsel %vm950_vm9, 1.0, %v2942_v32  ;;  %v947_v37 = vpop.permute.xlu0 %946 }
 0x1a4   : > { %vm955_vm14 = vcmp.eq.s32.totalorder %v3407_v30, %v947_v37 }
 0x1a5   : > { %1102 = vperm.xlu1 %2590, %v3325_v5   ;;  %v3565_v51 = vsel %vm955_vm14, 1.0, %v2942_v32 }
 0x1a6   : > { %v666_v34 = vpop.permute.xlu1 %665 }
 0x1a7   : > { %vm688_vm10 = vcmp.eq.s32.totalorder %v3407_v30, %v666_v34 }
 0x1a8   : > { %v2096_v38 = vsel %vm688_vm10, 1.0, %v2942_v32  ;;  %v669_v39 = vpop.permute.xlu0 %668 }
 0x1a9   : > { %vm689_vm11 = vcmp.eq.s32.totalorder %v3407_v30, %v669_v39 }
 0x1aa   : > { %v3545_v13 = vpop.permute.xlu1 %671  ;;  %v2097_v41 = vsel %vm689_vm11, 1.0, %v2942_v32 }
 0x1ab   : > { %v712_v42 = vpack.c.bf16 %v2097_v41, %v2096_v38  ;;  %vm690_vm0 = vcmp.eq.s32.totalorder %v3407_v30, %v3545_v13 }
 0x1ac   : > { %v681_v19 = vpop.permute.xlu0 %680 }
 0x1ad   : > { %2358 = vmatprep.mubr.msk.bf16.mxu0 %vm1132_vm5, %v712_v42  ;;  %vm693_vm3 = vcmp.eq.s32.totalorder %v3407_v30, %v681_v19 }
 0x1ae   : > { %v3548_v40 = vpop.permute.xlu1 %674 }
 0x1af   : > { %vm691_vm1 = vcmp.eq.s32.totalorder %v3407_v30, %v3548_v40  ;;  %v2101_v40 = vsel %vm693_vm3, 1.0, %v2942_v32 }
 0x1b1   : > { %v3589_v23 = vpop.permute.xlu0 %977 }
 0x1b3   : > { %v941_v5 = vpop.permute.xlu1 %940 }
 0x1b4   : > { %vm953_vm13 = vcmp.eq.s32.totalorder %v3407_v30, %v941_v5 }
 0x1b5   : > { %v3560_v45 = vsel %vm953_vm13, 1.0, %v2942_v32  ;;  %v3593_v5 = vpop.permute.xlu0 %986 }
 0x1b7   : > { %v944_v50 = vpop.permute.xlu1 %943 }
 0x1b8   : > { %vm954_vm15 = vcmp.eq.s32.totalorder %v3407_v30, %v944_v50 }
 0x1b9   : > { %v3569_v55 = vsel %vm954_vm15, 1.0, %v2942_v32  ;;  %v3597_v58 = vpop.permute.xlu0 %989 }
 0x1bc   : > { %v3573_v60 = vpop.permute.xlu1 %677 }
 0x1bd   : > { %vm692_vm2 = vcmp.eq.s32.totalorder %v3407_v30, %v3573_v60 }
 0x1be   : > { %v2100_v13 = vsel %vm692_vm2, 1.0, %v2942_v32 }
 0x1bf   : > { %v714_v19 = vpack.c.bf16 %v2101_v40, %v2100_v13 }
 0x1c0   : > { %v3575_v61 = vpop.permute.xlu1 %683 }
 0x1c1   : > { %vm694_vm7 = vcmp.eq.s32.totalorder %v3407_v30, %v3575_v61 }
 0x1c4   : > { %v3577_v1 = vpop.permute.xlu1 %686 }
 0x1c5   : > { %vm695_vm8 = vcmp.eq.s32.totalorder %v3407_v30, %v3577_v1 }
 0x1c9   : > { %v3579_v3 = vpop.permute.xlu1 %980 }
 0x1ca   : > { %vm1001_vm3 = vcmp.eq.s32.totalorder %v3407_v30, %v3579_v3 }
 0x1cd   : > { %v3581_v10 = vpop.permute.xlu1 %983 }
 0x1d2   : > { %v3583_v11 = vpop.permute.xlu1 %717 }
 0x1d3   : > { %vm740_vm4 = vcmp.eq.s32.totalorder %v3407_v30, %v3583_v11 }
 0x1d4   : > { %v2104_v61 = vsel %vm740_vm4, 1.0, %v2942_v32  ;;  %vm1000_vm4 = vcmp.eq.s32.totalorder %v3407_v30, %v3589_v23 }
 0x1d6   : > { %v3585_v18 = vpop.permute.xlu1 %723 }
 0x1d7   : > { %vm742_vm11 = vcmp.eq.s32.totalorder %v3407_v30, %v3585_v18 }
 0x1da   : > { %v3587_v22 = vpop.permute.xlu1 %726 }
 0x1db   : > { %vm743_vm12 = vcmp.eq.s32.totalorder %v3407_v30, %v3587_v22  ;;  %v2106_v22 = vsel %vm742_vm11, 1.0, %v2942_v32 }
 0x1df   : > { %v3591_v37 = vpop.permute.xlu1 %992 }
 0x1e1   : > { %v2344_v27 = vpop.f32.mrb[0].mxu0 }
 0x1e2   : > { %v604_v31 = vadd.f32 %v2344_v27, %v2083_v26  ;;  %v595_v34 = vpop.f32.mrb[1].mxu0 }
 0x1e3   : > { %v596_v38 = vadd.f32 %v2083_v26, %v595_v34  ;;  %v2345_v39 = vpop.f32.mrb[2].mxu0  ;;  %v3595_v29 = vpop.permute.xlu1 %995 }
 0x1e4   : > { %v607_v41 = vadd.f32 %v2345_v39, %v2083_v26  ;;  %v598_v42 = vpop.f32.mrb[3].mxu0  ;;  %v628_v56 = vmax.f32 %v604_v31, 0.0 }
 0x1e5   : > { %v599_v50 = vadd.f32 %v2083_v26, %v598_v42  ;;  %v626_v14 = vmax.f32 %v596_v38, 0.0 }
 0x1e6   : > { %v629_v46 = vmax.f32 %v607_v41, 0.0 }
 0x1e7   : > { %v627_v16 = vmax.f32 %v599_v50, 0.0  ;;  %v3603_v50 = vpop.permute.xlu0 %998 }
 0x1e8   : > { %v635_v15 = vpack.c.bf16 %v629_v46, %v628_v56  ;;  %v3599_v39 = vpop.permute.xlu1 %729  ;;  %vm1007_vm11 = vcmp.eq.s32.totalorder %v3407_v30, %v3603_v50 }
 0x1e9   : > { %v634_v9 = vpack.c.bf16 %v627_v16, %v626_v14  ;;  %v2348_v8 = vpop.f32.mrb[4].mxu0  ;;  %vm744_vm9 = vcmp.eq.s32.totalorder %v3407_v30, %v3599_v39 }
 0x1ea   : > { %v620_v27 = vadd.f32 %v2348_v8, %v2083_v26  ;;  %v611_v63 = vpop.f32.mrb[5].mxu0  ;;  %v2108_v39 = vsel %vm744_vm9, 1.0, %v2942_v32  ;;  %vm1004_vm9 = vcmp.eq.s32.totalorder %v3407_v30, %v3597_v58 }
 0x1eb   : > { %v612_v34 = vadd.f32 %v2083_v26, %v611_v63  ;;  %v2349_v53 = vpop.f32.mrb[6].mxu0  ;;  %2350 = vmatprep.subr.bf16.mxu0 %v634_v9  ;;  %2430 = vmatprep.subr.bf16.mxu1 %v634_v9  ;;  %v2148_v3 = vsel %vm1004_vm9, 1.0, %v2942_v32 }
 0x1ec   : > { %v623_v42 = vadd.f32 %v2349_v53, %v2083_v26  ;;  %v614_v31 = vpop.f32.mrb[7].mxu0  ;;  %2351 = vmatpush3.bf16.msra.mxu0 %v634_v9  ;;  %2434 = vmatpush3.bf16.msra.mxu1 %v634_v9  ;;  %v632_v46 = vmax.f32 %v620_v27, 0.0  ;;  %v3601_v56 = vpop.permute.xlu1 %735  ;;  %v2098_v9 = vsel %vm690_vm0, 1.0, %v2942_v32 }
 0x1ed   : > { %v615_v41 = vadd.f32 %v2083_v26, %v614_v31  ;;  %2352 = vmatprep.subr.bf16.mxu0 %v635_v15  ;;  %2431 = vmatprep.subr.bf16.mxu1 %v635_v15  ;;  %v630_v14 = vmax.f32 %v612_v34, 0.0  ;;  %v721_v26 = vpop.permute.xlu0 %720  ;;  %v2102_v34 = vsel %vm694_vm7, 1.0, %v2942_v32  ;;  %v2107_v31 = vsel %vm743_vm12, 1.0, %v2942_v32 }
 0x1ee   : > { %v633_v16 = vmax.f32 %v623_v42, 0.0  ;;  %vm741_vm6 = vcmp.eq.s32.totalorder %v3407_v30, %v721_v26  ;;  %v2103_v42 = vsel %vm695_vm8, 1.0, %v2942_v32  ;;  %v765_v52 = vpack.c.bf16 %v2107_v31, %v2106_v22 }
 0x1ef   : > { %v631_v8 = vmax.f32 %v615_v41, 0.0  ;;  %v2105_v1 = vsel %vm741_vm6, 1.0, %v2942_v32  ;;  %vm746_vm13 = vcmp.eq.s32.totalorder %v3407_v30, %v3601_v56  ;;  %vm1002_vm6 = vcmp.eq.s32.totalorder %v3407_v30, %v3581_v10 }
 0x1f0   : > { %v637_v38 = vpack.c.bf16 %v633_v16, %v632_v46  ;;  %2353 = vmatpush3.bf16.msra.mxu0 %v635_v15  ;;  %2435 = vmatpush3.bf16.msra.mxu1 %v635_v15  ;;  %v739_v53 = vpop.permute.xlu1 %738  ;;  %v2099_v15 = vsel %vm691_vm1, 1.0, %v2942_v32  ;;  %v764_v35 = vpack.c.bf16 %v2105_v1, %v2104_v61  ;;  %vm1003_vm7 = vcmp.eq.s32.totalorder %v3407_v30, %v3593_v5 }
 0x1f1   : > { %v636_v63 = vpack.c.bf16 %v631_v8, %v630_v14  ;;  %v713_v60 = vpack.c.bf16 %v2099_v15, %v2098_v9  ;;  %v733_v33 = vpop.permute.xlu0 %732  ;;  %vm747_vm14 = vcmp.eq.s32.totalorder %v3407_v30, %v739_v53  ;;  %v3929_v14 = vpack.c.bf16 %v3489_v6, %v3480_v0 }
 0x1f2   : > { %vm745_vm10 = vcmp.eq.s32.totalorder %v3407_v30, %v733_v33  ;;  %v2111_v16 = vsel %vm747_vm14, 1.0, %v2942_v32  ;;  %v3931_v6 = vpack.c.bf16 %v3506_v12, %v3502_v4  ;;  %v3932_v15 = vpack.c.bf16 %v3517_v21, %v3513_v20 }
 0x1f3   : > { %2354 = vmatprep.subr.bf16.mxu0 %v636_v63  ;;  %2432 = vmatprep.subr.bf16.mxu1 %v636_v63  ;;  %v2109_v18 = vsel %vm745_vm10, 1.0, %v2942_v32  ;;  %v3935_v4 = vpack.c.bf16 %v3560_v45, %v3555_v43  ;;  %v2145_v12 = vsel %vm1001_vm3, 1.0, %v2942_v32  ;;  %v2144_v20 = vsel %vm1000_vm4, 1.0, %v2942_v32 }
 0x1f4   : > { %2355 = vmatpush3.bf16.msra.mxu0 %v636_v63  ;;  %2436 = vmatpush3.bf16.msra.mxu1 %v636_v63  ;;  %v766_v46 = vpack.c.bf16 %v2109_v18, %v2108_v39  ;;  %v1024_v21 = vpack.c.bf16 %v2145_v12, %v2144_v20  ;;  %vm1005_vm8 = vcmp.eq.s32.totalorder %v3407_v30, %v3591_v37  ;;  %v2147_v43 = vsel %vm1003_vm7, 1.0, %v2942_v32  ;;  %v2617_v12 = vld [vmem:[#allocation12 + $0x30] sm:$0xff]   ;;  %v2618_v20 = vld [vmem:[#allocation12 + $0x78] sm:$0xff]  }
 0x1f5   : > { %2356 = vmatprep.subr.bf16.mxu0 %v637_v38  ;;  %2433 = vmatprep.subr.bf16.mxu1 %v637_v38  ;;  %v3616_v27 = vpop.permute.xlu1 %1032  ;;  %v773_v41 = vpop.permute.xlu0 %772  ;;  %v2149_v45 = vsel %vm1005_vm8, 1.0, %v2942_v32  ;;  %vm1006_vm10 = vcmp.eq.s32.totalorder %v3407_v30, %v3595_v29  ;;  %v2151_v5 = vsel %vm1007_vm11, 1.0, %v2942_v32 }
 0x1f6   : > { %vm793_vm0 = vcmp.eq.s32.totalorder %v3407_v30, %v773_v41  ;;  %v1026_v10 = vpack.c.bf16 %v2149_v45, %v2148_v3  ;;  %vm1053_vm12 = vcmp.eq.s32.totalorder %v3407_v30, %v3616_v27  ;;  %v2150_v37 = vsel %vm1006_vm10, 1.0, %v2942_v32 }
 0x1f7   : > { %v2113_v56 = vsel %vm793_vm0, 1.0, %v2942_v32  ;;  %v2153_v13 = vsel %vm1053_vm12, 1.0, %v2942_v32  ;;  %v1027_v50 = vpack.c.bf16 %v2151_v5, %v2150_v37 }
 0x1f8   : > { %2357 = vmatpush3.bf16.msra.mxu0 %v637_v38  ;;  %2437 = vmatpush3.bf16.msra.mxu1 %v637_v38 }
 0x1f9   : > { %v3635_v11 = vpop.permute.xlu1 %1035 }
 0x1fa   : > { %vm1054_vm14 = vcmp.eq.s32.totalorder %v3407_v30, %v3635_v11 }
 0x1fb   : > { %2359 = vmatmul.mubr.msk.bf16.vlgmr.msra.gmra.mrb[8].mxu0 %vm1132_vm5, %v713_v60  ;;  %2379 = vmatmul.mubr.msk.bf16.vlgmr.msra.gmra.mrb[0].mxu1 %vm1132_vm5, %v819_v36  ;;  %v715_v36 = vpack.c.bf16 %v2103_v42, %v2102_v34  ;;  %v2154_v60 = vsel %vm1054_vm14, 1.0, %v2942_v32 }
 0x1fc   : > { %2362 = vmatprep.mubr.msk.bf16.mxu0 %vm1132_vm5, %v714_v19  ;;  %2382 = vmatprep.mubr.msk.bf16.mxu1 %vm1132_vm5, %v868_v48  ;;  %v3927_v48 = vpack.c.bf16 %v3462_v57, %v3456_v54  ;;  %v3928_v54 = vpack.c.bf16 %v3473_v62, %v3467_v59  ;;  %v2110_v57 = vsel %vm746_vm13, 1.0, %v2942_v32  ;;  %v3930_v62 = vpack.c.bf16 %v3492_v7, %v3483_v2 }
 0x1fd   : > { %v767_v63 = vpack.c.bf16 %v2111_v16, %v2110_v57  ;;  %v3933_v2 = vpack.c.bf16 %v3528_v25, %v3525_v24  ;;  %v3934_v7 = vpack.c.bf16 %v3536_v17, %v3539_v28  ;;  %v1030_v24 = vpop.permute.xlu0 %1029  ;;  %v3936_v25 = vpack.c.bf16 %v3565_v51, %v3569_v55 }
 0x1fe   : > { %v770_v44 = vpop.permute.xlu1 %769  ;;  %v2146_v28 = vsel %vm1002_vm6, 1.0, %v2942_v32  ;;  %vm1052_vm13 = vcmp.eq.s32.totalorder %v3407_v30, %v1030_v24 }
 0x1ff   : > { %vm792_vm15 = vcmp.eq.s32.totalorder %v3407_v30, %v770_v44  ;;  %v1025_v51 = vpack.c.bf16 %v2147_v43, %v2146_v28  ;;  %v2152_v29 = vsel %vm1052_vm13, 1.0, %v2942_v32 }
 0x200   : > { %v2112_v8 = vsel %vm792_vm15, 1.0, %v2942_v32  ;;  %v1076_v26 = vpack.c.bf16 %v2153_v13, %v2152_v29 }
 0x201   : > { %v816_v59 = vpack.c.bf16 %v2113_v56, %v2112_v8  ;;  %v1039_v55 = vpop.permute.xlu0 %1038 }
 0x202   : > { %v776_v49 = vpop.permute.xlu1 %775  ;;  %vm1055_vm15 = vcmp.eq.s32.totalorder %v3407_v30, %v1039_v55 }
 0x203   : > { %2363 = vmatmul.mubr.msk.bf16.gmra.mrb[12].mxu0 %vm1132_vm5, %v715_v36  ;;  %2383 = vmatmul.mubr.msk.bf16.gmra.mrb[4].mxu1 %vm1132_vm5, %v3926_v47  ;;  %vm794_vm1 = vcmp.eq.s32.totalorder %v3407_v30, %v776_v49  ;;  %v2155_v19 = vsel %vm1055_vm15, 1.0, %v2942_v32 }
 0x204   : > { %2386 = vmatprep.mubr.msk.bf16.mxu1 %vm1132_vm5, %v3927_v48  ;;  %2366 = vmatprep.mubr.msk.bf16.mxu0 %vm1132_vm5, %v764_v35  ;;  %v2114_v0 = vsel %vm794_vm1, 1.0, %v2942_v32  ;;  %v1077_v34 = vpack.c.bf16 %v2155_v19, %v2154_v60 }
 0x205   : > { %v1042_v58 = vpop.permute.xlu0 %1041 }
 0x206   : > { %v779_v38 = vpop.permute.xlu1 %778  ;;  %vm1056_vm1 = vcmp.eq.s32.totalorder %v3407_v30, %v1042_v58 }
 0x207   : > { %vm795_vm2 = vcmp.eq.s32.totalorder %v3407_v30, %v779_v38  ;;  %v2156_v11 = vsel %vm1056_vm1, 1.0, %v2942_v32 }
 0x208   : > { %v2115_v53 = vsel %vm795_vm2, 1.0, %v2942_v32 }
 0x209   : > { %v817_v9 = vpack.c.bf16 %v2115_v53, %v2114_v0  ;;  %v1051_v27 = vpop.permute.xlu0 %1050  ;;  %v2607_v0 = vld [vmem:[#allocation12 + $0x8] sm:$0xff]   ;;  %v2610_v53 = vld [vmem:[#allocation12 + $0x58] sm:$0xff]  }
 0x20a   : > { %vm1059_vm6 = vcmp.eq.s32.totalorder %v3407_v30, %v1051_v27 }
 0x20b   : > { %2367 = vmatmul.mubr.msk.bf16.gmra.mrb[16].mxu0 %vm1132_vm5, %v765_v52  ;;  %2387 = vmatmul.mubr.msk.bf16.gmra.mrb[8].mxu1 %vm1132_vm5, %v3928_v54  ;;  %v1045_v17 = vpop.permute.xlu1 %1044  ;;  %v2159_v48 = vsel %vm1059_vm6, 1.0, %v2942_v32 }
 0x20c   : > { %2390 = vmatprep.mubr.msk.bf16.mxu1 %vm1132_vm5, %v3929_v14  ;;  %2370 = vmatprep.mubr.msk.bf16.mxu0 %vm1132_vm5, %v766_v46  ;;  %vm1057_vm0 = vcmp.eq.s32.totalorder %v3407_v30, %v1045_v17 }
 0x20d   : > { %v2157_v1 = vsel %vm1057_vm0, 1.0, %v2942_v32  ;;  %v1085_v42 = vpop.permute.xlu0 %1084 }
 0x20e   : > { %v1078_v33 = vpack.c.bf16 %v2157_v1, %v2156_v11  ;;  %vm1105_vm3 = vcmp.eq.s32.totalorder %v3407_v30, %v1085_v42 }
 0x20f   : > { %v1048_v23 = vpop.permute.xlu1 %1047  ;;  %v2161_v44 = vsel %vm1105_vm3, 1.0, %v2942_v32 }
 0x210   : > { %vm1058_vm4 = vcmp.eq.s32.totalorder %v3407_v30, %v1048_v23 }
 0x211   : > { %v2158_v47 = vsel %vm1058_vm4, 1.0, %v2942_v32  ;;  %v1094_v31 = vpop.permute.xlu0 %1093 }
 0x212   : > { %v1079_v18 = vpack.c.bf16 %v2159_v48, %v2158_v47  ;;  %vm1108_vm10 = vcmp.eq.s32.totalorder %v3407_v30, %v1094_v31 }
 0x213   : > { %2371 = vmatmul.mubr.msk.bf16.gmra.mrb[20].mxu0 %vm1132_vm5, %v767_v63  ;;  %2391 = vmatmul.mubr.msk.bf16.gmra.mrb[12].mxu1 %vm1132_vm5, %v3930_v62  ;;  %v2164_v52 = vsel %vm1108_vm10, 1.0, %v2942_v32  ;;  %v2604_v63 = vld [vmem:[#allocation12 + $0x40] sm:$0xff]   ;;  %v2606_v62 = vld [vmem:[#allocation12 + $0x48] sm:$0xff]  }
 0x214   : > { %2394 = vmatprep.mubr.msk.bf16.mxu1 %vm1132_vm5, %v3931_v6  ;;  %2374 = vmatprep.mubr.msk.bf16.mxu0 %vm1132_vm5, %v816_v59  ;;  %v1082_v40 = vpop.permute.xlu1 %1081  ;;  %v2605_v59 = vld [vmem:[#allocation12] sm:$0xff]   ;;  %v2609_v6 = vld [vmem:[#allocation12 + $0x10] sm:$0xff]  }
 0x215   : > { %vm1104_vm2 = vcmp.eq.s32.totalorder %v3407_v30, %v1082_v40  ;;  %v1100_v57 = vpop.permute.xlu0 %1099  ;;  %2286 = vmatprep.subr.bf16.mxu0 %v2604_v63 }
 0x216   : > { %v2160_v36 = vsel %vm1104_vm2, 1.0, %v2942_v32  ;;  %vm1110_vm12 = vcmp.eq.s32.totalorder %v3407_v30, %v1100_v57  ;;  %2287 = vmatpush3.bf16.msra.mxu0 %v2605_v59 }
 0x217   : > { %v1128_v39 = vpack.c.bf16 %v2161_v44, %v2160_v36  ;;  %v2166_v56 = vsel %vm1110_vm12, 1.0, %v2942_v32  ;;  %2288 = vmatprep.subr.bf16.mxu0 %v2606_v62 }
 0x218   : > { %v1088_v61 = vpop.permute.xlu1 %1087 }
 0x219   : > { %vm1106_vm7 = vcmp.eq.s32.totalorder %v3407_v30, %v1088_v61 }
 0x21a   : > { %v2162_v41 = vsel %vm1106_vm7, 1.0, %v2942_v32  ;;  %2289 = vmatpush3.bf16.msra.mxu0 %v2607_v0 }
 0x21b   : > { %2375 = vmatmul.mubr.msk.bf16.gmra.mrb[24].mxu0 %vm1132_vm5, %v817_v9  ;;  %2395 = vmatmul.mubr.msk.bf16.gmra.mrb[16].mxu1 %vm1132_vm5, %v3932_v15  ;;  %v2611_v9 = vld [vmem:[#allocation12 + $0x18] sm:$0xff]   ;;  %v2613_v15 = vld [vmem:[#allocation12 + $0x20] sm:$0xff]  }
 0x21c   : > { %2398 = vmatprep.mubr.msk.bf16.mxu1 %vm1132_vm5, %v3933_v2  ;;  %v1091_v35 = vpop.permute.xlu1 %1090  ;;  %v2614_v2 = vld [vmem:[#allocation12 + $0x68] sm:$0xff]  }
 0x21d   : > { %vm1107_vm8 = vcmp.eq.s32.totalorder %v3407_v30, %v1091_v35 }
 0x21e   : > { %v2163_v46 = vsel %vm1107_vm8, 1.0, %v2942_v32 }
 0x21f   : > { %v1129_v16 = vpack.c.bf16 %v2163_v46, %v2162_v41 }
 0x220   : > { %v1097_v22 = vpop.permute.xlu1 %1096 }
 0x221   : > { %vm1109_vm9 = vcmp.eq.s32.totalorder %v3407_v30, %v1097_v22 }
 0x222   : > { %v2165_v49 = vsel %vm1109_vm9, 1.0, %v2942_v32 }
 0x223   : > { %2399 = vmatmul.mubr.msk.bf16.gmra.mrb[20].mxu1 %vm1132_vm5, %v3934_v7  ;;  %v1130_v14 = vpack.c.bf16 %v2165_v49, %v2164_v52  ;;  %v2615_v7 = vld [vmem:[#allocation12 + $0x28] sm:$0xff]  }
 0x224   : > { %2402 = vmatprep.mubr.msk.bf16.mxu1 %vm1132_vm5, %v3935_v4  ;;  %v1103_v54 = vpop.permute.xlu1 %1102  ;;  %v2616_v4 = vld [vmem:[#allocation12 + $0x70] sm:$0xff]  }
 0x225   : > { %vm1111_vm11 = vcmp.eq.s32.totalorder %v3407_v30, %v1103_v54  ;;  %v2608_v30 = vld [vmem:[#allocation12 + $0x50] sm:$0xff]  }
 0x226   : > { %v2167_v8 = vsel %vm1111_vm11, 1.0, %v2942_v32  ;;  %2290 = vmatprep.subr.bf16.mxu0 %v2608_v30  ;;  %v2612_v32 = vld [vmem:[#allocation12 + $0x60] sm:$0xff]  }
 0x227   : > { %v1131_v38 = vpack.c.bf16 %v2167_v8, %v2166_v56  ;;  %2291 = vmatpush3.bf16.msra.mxu0 %v2609_v6 }
 0x228   : > { %2292 = vmatprep.subr.bf16.mxu0 %v2610_v53 }
 0x22b   : > { %2403 = vmatmul.mubr.msk.bf16.gmra.mrb[24].mxu1 %vm1132_vm5, %v3936_v25  ;;  %2293 = vmatpush3.bf16.msra.mxu0 %v2611_v9 }
 0x22c   : > { %2406 = vmatprep.mubr.msk.bf16.mxu1 %vm1132_vm5, %v1024_v21  ;;  %2294 = vmatprep.subr.bf16.mxu0 %v2612_v32  ;;  %v2619_v21 = vld [vmem:[#allocation12 + $0x38] sm:$0xff]  }
 0x22f   : > { %2295 = vmatpush3.bf16.msra.mxu0 %v2613_v15 }
 0x230   : > { %2296 = vmatprep.subr.bf16.mxu0 %v2614_v2 }
 0x233   : > { %2407 = vmatmul.mubr.msk.bf16.gmra.mrb[28].mxu1 %vm1132_vm5, %v1025_v51  ;;  %2297 = vmatpush3.bf16.msra.mxu0 %v2615_v7 }
 0x234   : > { %2410 = vmatprep.mubr.msk.bf16.mxu1 %vm1132_vm5, %v1026_v10  ;;  %2298 = vmatprep.subr.bf16.mxu0 %v2616_v4 }
 0x237   : > { %2299 = vmatpush3.bf16.msra.mxu0 %v2617_v12 }
 0x238   : > { %2300 = vmatprep.subr.bf16.mxu0 %v2618_v20 }
 0x23b   : > { %2411 = vmatmul.mubr.msk.bf16.gmra.mrb[32].mxu1 %vm1132_vm5, %v1027_v50  ;;  %2301 = vmatpush3.bf16.msra.mxu0 %v2619_v21 }
 0x23c   : > { %2414 = vmatprep.mubr.msk.bf16.mxu1 %vm1132_vm5, %v1076_v26 }
 0x243   : > { %2415 = vmatmul.mubr.msk.bf16.gmra.mrb[36].mxu1 %vm1132_vm5, %v1077_v34 }
 0x244   : > { %2418 = vmatprep.mubr.msk.bf16.mxu1 %vm1132_vm5, %v1078_v33 }
 0x24b   : > { %2419 = vmatmul.mubr.msk.bf16.gmra.mrb[40].mxu1 %vm1132_vm5, %v1079_v18 }
 0x24c   : > { %2422 = vmatprep.mubr.msk.bf16.mxu1 %vm1132_vm5, %v1128_v39 }
 0x253   : > { %2423 = vmatmul.mubr.msk.bf16.gmra.mrb[44].mxu1 %vm1132_vm5, %v1129_v16 }
 0x254   : > { %2426 = vmatprep.mubr.msk.bf16.mxu1 %vm1132_vm5, %v1130_v14 }
 0x25b   : > { %2427 = vmatmul.mubr.msk.bf16.gmra.mrb[48].mxu1 %vm1132_vm5, %v1131_v38 }
 0x2ce   : > { %v2360_v24 = vpop.f32.mrb[8].mxu0  ;;  %v2380_v25 = vpop.f32.mrb[0].mxu1 }
 0x2cf   : > { %v1275_v17 = vpop.f32.mrb[9].mxu0  ;;  %v1355_v28 = vpop.f32.mrb[1].mxu1 }
 0x2d0   : > { %v2361_v43 = vpop.f32.mrb[10].mxu0  ;;  %v2381_v45 = vpop.f32.mrb[2].mxu1 }
 0x2d1   : > { %v1278_v3 = vpop.f32.mrb[11].mxu0  ;;  %v1358_v51 = vpop.f32.mrb[3].mxu1 }
 0x2d6   : > { %v2364_v55 = vpop.f32.mrb[12].mxu0  ;;  %v2384_v10 = vpop.f32.mrb[4].mxu1 }
 0x2d7   : > { %v1291_v23 = vpop.f32.mrb[13].mxu0  ;;  %v1371_v58 = vpop.f32.mrb[5].mxu1 }
 0x2d8   : > { %v2365_v37 = vpop.f32.mrb[14].mxu0  ;;  %v2385_v5 = vpop.f32.mrb[6].mxu1 }
 0x2d9   : > { %v1294_v13 = vpop.f32.mrb[15].mxu0  ;;  %v1374_v29 = vpop.f32.mrb[7].mxu1 }
 0x2de   : > { %v2368_v40 = vpop.f32.mrb[16].mxu0  ;;  %v2388_v50 = vpop.f32.mrb[8].mxu1 }
 0x2df   : > { %v1564_v26 = vmax.f32 %v2360_v24, %v2368_v40  ;;  %v1307_v27 = vpop.f32.mrb[17].mxu0  ;;  %v1387_v60 = vpop.f32.mrb[9].mxu1 }
 0x2e0   : > { %v1562_v19 = vmax.f32 %v1275_v17, %v1307_v27  ;;  %v2369_v61 = vpop.f32.mrb[18].mxu0  ;;  %v2389_v1 = vpop.f32.mrb[10].mxu1 }
 0x2e1   : > { %v1565_v11 = vmax.f32 %v2361_v43, %v2369_v61  ;;  %v1310_v34 = vpop.f32.mrb[19].mxu0  ;;  %v1390_v42 = vpop.f32.mrb[11].mxu1 }
 0x2e2   : > { %v1563_v33 = vmax.f32 %v1278_v3, %v1310_v34 }
 0x2e6   : > { %v2372_v35 = vpop.f32.mrb[20].mxu0  ;;  %v2392_v36 = vpop.f32.mrb[12].mxu1 }
 0x2e7   : > { %v1568_v44 = vmax.f32 %v2364_v55, %v2372_v35  ;;  %v1323_v47 = vpop.f32.mrb[21].mxu0  ;;  %v1403_v48 = vpop.f32.mrb[13].mxu1 }
 0x2e8   : > { %v1566_v39 = vmax.f32 %v1291_v23, %v1323_v47  ;;  %v2373_v18 = vpop.f32.mrb[22].mxu0  ;;  %v2393_v22 = vpop.f32.mrb[14].mxu1 }
 0x2e9   : > { %v1576_v31 = vmax.f32 %v1568_v44, %v2380_v25  ;;  %v1569_v41 = vmax.f32 %v2365_v37, %v2373_v18  ;;  %v1326_v46 = vpop.f32.mrb[23].mxu0  ;;  %v1406_v49 = vpop.f32.mrb[15].mxu1 }
 0x2ea   : > { %v1574_v52 = vmax.f32 %v1566_v39, %v1355_v28  ;;  %v1567_v54 = vmax.f32 %v1294_v13, %v1326_v46 }
 0x2eb   : > { %v1577_v57 = vmax.f32 %v1569_v41, %v2381_v45  ;;  %v1584_v16 = vmax.f32 %v1576_v31, %v2388_v50 }
 0x2ec   : > { %v1575_v14 = vmax.f32 %v1567_v54, %v1358_v51  ;;  %v1582_v8 = vmax.f32 %v1574_v52, %v1387_v60 }
 0x2ed   : > { %v1585_v56 = vmax.f32 %v1577_v57, %v2389_v1 }
 0x2ee   : > { %v2376_v38 = vpop.f32.mrb[24].mxu0  ;;  %v2396_v63 = vpop.f32.mrb[16].mxu1  ;;  %v1583_v59 = vmax.f32 %v1575_v14, %v1390_v42 }
 0x2ef   : > { %v1572_v62 = vmax.f32 %v1564_v26, %v2376_v38  ;;  %v1592_v0 = vmax.f32 %v1584_v16, %v2396_v63  ;;  %v1339_v30 = vpop.f32.mrb[25].mxu0  ;;  %v1419_v6 = vpop.f32.mrb[17].mxu1 }
 0x2f0   : > { %v1570_v53 = vmax.f32 %v1562_v19, %v1339_v30  ;;  %v1590_v9 = vmax.f32 %v1582_v8, %v1419_v6  ;;  %v2377_v32 = vpop.f32.mrb[26].mxu0  ;;  %v2397_v15 = vpop.f32.mrb[18].mxu1 }
 0x2f1   : > { %v1580_v2 = vmax.f32 %v1572_v62, %v2384_v10  ;;  %v1573_v7 = vmax.f32 %v1565_v11, %v2377_v32  ;;  %v1593_v4 = vmax.f32 %v1585_v56, %v2397_v15  ;;  %v1342_v12 = vpop.f32.mrb[27].mxu0  ;;  %v1422_v20 = vpop.f32.mrb[19].mxu1 }
 0x2f2   : > { %v1578_v21 = vmax.f32 %v1570_v53, %v1371_v58  ;;  %v1571_v24 = vmax.f32 %v1563_v33, %v1342_v12  ;;  %v1591_v25 = vmax.f32 %v1583_v59, %v1422_v20 }
 0x2f3   : > { %v1581_v17 = vmax.f32 %v1573_v7, %v2385_v5  ;;  %v1588_v28 = vmax.f32 %v1580_v2, %v2392_v36 }
 0x2f4   : > { %v1579_v43 = vmax.f32 %v1571_v24, %v1374_v29  ;;  %v1586_v45 = vmax.f32 %v1578_v21, %v1403_v48 }
 0x2f5   : > { %v1589_v3 = vmax.f32 %v1581_v17, %v2393_v22 }
 0x2f6   : > { %v2400_v51 = vpop.f32.mrb[20].mxu1  ;;  %v1587_v55 = vmax.f32 %v1579_v43, %v1406_v49 }
 0x2f7   : > { %v1596_v23 = vmax.f32 %v1588_v28, %v2400_v51  ;;  %v1435_v37 = vpop.f32.mrb[21].mxu1 }
 0x2f8   : > { %v1594_v13 = vmax.f32 %v1586_v45, %v1435_v37  ;;  %v2401_v40 = vpop.f32.mrb[22].mxu1 }
 0x2f9   : > { %v1597_v50 = vmax.f32 %v1589_v3, %v2401_v40  ;;  %v1438_v10 = vpop.f32.mrb[23].mxu1  ;;  %v2621_v40 = vld [vmem:[%s3292_s14 + $0x8] sm:$0xff]  }
 0x2fa   : > { %v1595_v26 = vmax.f32 %v1587_v55, %v1438_v10  ;;  %v2622_v10 = vld [vmem:[%s3292_s14 + $0x10] sm:$0xff]  }
 0x2fe   : > { %v2404_v27 = vpop.f32.mrb[24].mxu1 }
 0x2ff   : > { %v1600_v60 = vmax.f32 %v1592_v0, %v2404_v27  ;;  %v1451_v19 = vpop.f32.mrb[25].mxu1 }
 0x300   : > { %v1598_v58 = vmax.f32 %v1590_v9, %v1451_v19  ;;  %v2405_v61 = vpop.f32.mrb[26].mxu1 }
 0x301   : > { %v1601_v1 = vmax.f32 %v1593_v4, %v2405_v61  ;;  %v1454_v5 = vpop.f32.mrb[27].mxu1 }
 0x302   : > { %v1599_v11 = vmax.f32 %v1591_v25, %v1454_v5  ;;  %v2620_v25 = vld [vmem:[%s3292_s14] sm:$0xff]  }
 0x306   : > { %v2408_v29 = vpop.f32.mrb[28].mxu1 }
 0x307   : > { %v1604_v34 = vmax.f32 %v1596_v23, %v2408_v29  ;;  %v1467_v42 = vpop.f32.mrb[29].mxu1 }
 0x308   : > { %v1602_v33 = vmax.f32 %v1594_v13, %v1467_v42  ;;  %v2409_v35 = vpop.f32.mrb[30].mxu1 }
 0x309   : > { %v1605_v36 = vmax.f32 %v1597_v50, %v2409_v35  ;;  %v1470_v44 = vpop.f32.mrb[31].mxu1 }
 0x30a   : > { %v1603_v47 = vmax.f32 %v1595_v26, %v1470_v44  ;;  %v2623_v26 = vld [vmem:[%s3292_s14 + $0x18] sm:$0xff]  }
 0x30e   : > { %v2412_v48 = vpop.f32.mrb[32].mxu1 }
 0x30f   : > { %v1608_v39 = vmax.f32 %v1600_v60, %v2412_v48  ;;  %v1483_v18 = vpop.f32.mrb[33].mxu1  ;;  %v2208_v60 = vld [vmem:[#allocation14] ss:$0 sm:$0xff] }
 0x310   : > { %v1606_v22 = vmax.f32 %v1598_v58, %v1483_v18  ;;  %v2413_v31 = vpop.f32.mrb[34].mxu1 }
 0x311   : > { %v1609_v41 = vmax.f32 %v1601_v1, %v2413_v31  ;;  %v1486_v46 = vpop.f32.mrb[35].mxu1 }
 0x312   : > { %v1607_v49 = vmax.f32 %v1599_v11, %v1486_v46 }
 0x316   : > { %v2416_v52 = vpop.f32.mrb[36].mxu1 }
 0x317   : > { %v1612_v54 = vmax.f32 %v1604_v34, %v2416_v52  ;;  %v1499_v57 = vpop.f32.mrb[37].mxu1 }
 0x318   : > { %v1610_v16 = vmax.f32 %v1602_v33, %v1499_v57  ;;  %v2417_v14 = vpop.f32.mrb[38].mxu1 }
 0x319   : > { %v1613_v8 = vmax.f32 %v1605_v36, %v2417_v14  ;;  %v1502_v56 = vpop.f32.mrb[39].mxu1 }
 0x31a   : > { %v1611_v38 = vmax.f32 %v1603_v47, %v1502_v56 }
 0x31e   : > { %v2420_v63 = vpop.f32.mrb[40].mxu1 }
 0x31f   : > { %v1616_v59 = vmax.f32 %v1608_v39, %v2420_v63  ;;  %v1515_v62 = vpop.f32.mrb[41].mxu1 }
 0x320   : > { %v1614_v0 = vmax.f32 %v1606_v22, %v1515_v62  ;;  %v2421_v30 = vpop.f32.mrb[42].mxu1 }
 0x321   : > { %v1617_v6 = vmax.f32 %v1609_v41, %v2421_v30  ;;  %v1518_v53 = vpop.f32.mrb[43].mxu1 }
 0x322   : > { %v1615_v9 = vmax.f32 %v1607_v49, %v1518_v53 }
 0x326   : > { %v2424_v32 = vpop.f32.mrb[44].mxu1 }
 0x327   : > { %v1620_v15 = vmax.f32 %v1612_v54, %v2424_v32  ;;  %v1531_v2 = vpop.f32.mrb[45].mxu1 }
 0x328   : > { %v1618_v7 = vmax.f32 %v1610_v16, %v1531_v2  ;;  %v2425_v4 = vpop.f32.mrb[46].mxu1 }
 0x329   : > { %v1621_v12 = vmax.f32 %v1613_v8, %v2425_v4  ;;  %v1534_v20 = vpop.f32.mrb[47].mxu1 }
 0x32a   : > { %v1619_v21 = vmax.f32 %v1611_v38, %v1534_v20 }
 0x32b   : > { %v1627_v24 = vpack.c.bf16 %v1621_v12, %v1620_v15 }
 0x32c   : > { %v1626_v17 = vpack.c.bf16 %v1619_v21, %v1618_v7 }
 0x32e   : > { %v2428_v28 = vpop.f32.mrb[48].mxu1  ;;  %1821 = vmatprep.mubr.bf16.mxu0 %v1626_v17 }
 0x32f   : > { %v1624_v43 = vmax.f32 %v1616_v59, %v2428_v28  ;;  %v1547_v45 = vpop.f32.mrb[49].mxu1  ;;  %1822 = vmatmul.mubr.bf16.vlgmr.msra.gmra.mrb[28].mxu0 %v2620_v25 }
 0x330   : > { %v1622_v3 = vmax.f32 %v1614_v0, %v1547_v45  ;;  %v2429_v51 = vpop.f32.mrb[50].mxu1  ;;  %1829 = vmatprep.mubr.bf16.mxu0 %v1627_v24 }
 0x331   : > { %v1625_v55 = vmax.f32 %v1617_v6, %v2429_v51  ;;  %v1550_v23 = vpop.f32.mrb[51].mxu1 }
 0x332   : > { %v1623_v37 = vmax.f32 %v1615_v9, %v1550_v23 }
 0x333   : > { %v1629_v13 = vpack.c.bf16 %v1625_v55, %v1624_v43 }
 0x334   : > { %v1628_v50 = vpack.c.bf16 %v1623_v37, %v1622_v3 }
 0x337   : > { %1830 = vmatmul.mubr.bf16.gmra.mrb[32].mxu0 %v2621_v40 }
 0x338   : > { %1837 = vmatprep.mubr.bf16.mxu0 %v1628_v50 }
 0x33f   : > { %1838 = vmatmul.mubr.bf16.gmra.mrb[36].mxu0 %v2622_v10 }
 0x340   : > { %1845 = vmatprep.mubr.bf16.mxu0 %v1629_v13 }
 0x347   : > { %1846 = vmatmul.mubr.bf16.gmra.mrb[40].mxu0 %v2623_v26 }
 0x402   : > { %v2302_v27 = vpop.f32.mrb[28].mxu0 }
 0x403   : > { %v2303_v19 = vpop.f32.mrb[29].mxu0 }
 0x404   : > { %v2304_v58 = vadd.f32 %v2303_v19, %v2302_v27  ;;  %v2305_v61 = vpop.f32.mrb[30].mxu0 }
 0x405   : > { %v2306_v1 = vpop.f32.mrb[31].mxu0 }
 0x406   : > { %v1824_v5 = vadd.f32 %v2304_v58, %v2208_v60  ;;  %v2307_v11 = vadd.f32 %v2306_v1, %v2305_v61 }
 0x408   : > { %v1854_v29 = vmax.f32 %v1824_v5, 0.0  ;;  %v1827_v34 = vadd.f32 %v2307_v11, %v2208_v60 }
 0x40a   : > { %1862 = vst [vmem:[%s3792_s30] sm:$0xff] %v1854_v29  ;;  %v1855_v42 = vmax.f32 %v1827_v34, 0.0  ;;  %v2308_v33 = vpop.f32.mrb[32].mxu0 }
 0x40b   : > { %v2309_v35 = vpop.f32.mrb[33].mxu0 }
 0x40c   : > { %1863 = vst [vmem:[%s3792_s30 + $0x8] sm:$0xff] %v1855_v42  ;;  %v2310_v36 = vadd.f32 %v2309_v35, %v2308_v33  ;;  %v2311_v44 = vpop.f32.mrb[34].mxu0 }
 0x40d   : > { %v2312_v47 = vpop.f32.mrb[35].mxu0 }
 0x40e   : > { %v1832_v48 = vadd.f32 %v2310_v36, %v2208_v60  ;;  %v2313_v39 = vadd.f32 %v2312_v47, %v2311_v44 }
 0x410   : > { %v1856_v18 = vmax.f32 %v1832_v48, 0.0  ;;  %v1835_v22 = vadd.f32 %v2313_v39, %v2208_v60 }
 0x412   : > { %1864 = vst [vmem:[%s3792_s30 + $0x10] sm:$0xff] %v1856_v18  ;;  %v1857_v31 = vmax.f32 %v1835_v22, 0.0  ;;  %v2314_v41 = vpop.f32.mrb[36].mxu0 }
 0x413   : > { %v2315_v46 = vpop.f32.mrb[37].mxu0 }
 0x414   : > { %1865 = vst [vmem:[%s3792_s30 + $0x18] sm:$0xff] %v1857_v31  ;;  %v2316_v49 = vadd.f32 %v2315_v46, %v2314_v41  ;;  %v2317_v52 = vpop.f32.mrb[38].mxu0 }
 0x415   : > { %v2318_v54 = vpop.f32.mrb[39].mxu0 }
 0x416   : > { %v1840_v57 = vadd.f32 %v2316_v49, %v2208_v60  ;;  %v2319_v16 = vadd.f32 %v2318_v54, %v2317_v52 }
 0x418   : > { %v1858_v14 = vmax.f32 %v1840_v57, 0.0  ;;  %v1843_v8 = vadd.f32 %v2319_v16, %v2208_v60 }
 0x41a   : > { %1866 = vst [vmem:[%s3792_s30 + $0x20] sm:$0xff] %v1858_v14  ;;  %v1859_v56 = vmax.f32 %v1843_v8, 0.0  ;;  %v2320_v38 = vpop.f32.mrb[40].mxu0 }
 0x41b   : > { %v2321_v63 = vpop.f32.mrb[41].mxu0 }
 0x41c   : > { %1867 = vst [vmem:[%s3792_s30 + $0x28] sm:$0xff] %v1859_v56  ;;  %v2322_v59 = vadd.f32 %v2321_v63, %v2320_v38  ;;  %v2323_v62 = vpop.f32.mrb[42].mxu0 }
 0x41d   : > { %v2324_v0 = vpop.f32.mrb[43].mxu0 }
 0x41e   : > { %v1848_v30 = vadd.f32 %v2322_v59, %v2208_v60  ;;  %v2325_v6 = vadd.f32 %v2324_v0, %v2323_v62 }
 0x420   : > { %v1860_v53 = vmax.f32 %v1848_v30, 0.0  ;;  %v1851_v9 = vadd.f32 %v2325_v6, %v2208_v60 }
 0x422   : > { %1868 = vst [vmem:[%s3792_s30 + $0x30] sm:$0xff] %v1860_v53  ;;  %v1861_v32 = vmax.f32 %v1851_v9, 0.0 }
 0x424   : > { %1869 = vst [vmem:[%s3792_s30 + $0x38] sm:$0xff] %v1861_v32 }
 0x425   : > { %2839 = shalt.err (!%p2836_p0)
}
 0x426   : > { %s2840_s22 = scalar_lea.hbm %s3807_s10, 1024  ;;  %s2844_s21 = scalar_lea.hbm %s3938_s1, 2048 }
 0x427   : > { %p2841_p8 = scmp.ne.s32.totalorder %s3807_s10, %s2840_s22  ;;  %p2845_p2 = scmp.lt.u32.totalorder %s3807_s10, %s3938_s1 }
 0x428   : > { %p2846_p10 = scmp.lt.u32.totalorder %s2844_s21, %s2840_s22  ;;  %p2848_p7 = scmp.lt.u32.totalorder %s2840_s22, %s3807_s10 }
 0x429   : > { %p2842_p3 = pnand %p2841_p8, %p3939_p6 }
 0x42a   : > { %p2847_p5 = por %p2846_p10, %p2845_p2 }
 0x42b   : > { %p2843_p11 = pneg %p2842_p3 }
 0x42c   : > { %p2849_p4 = por %p2848_p7, %p2847_p5 }
 0x42e   : > { %p2850_p13 = pnand %p2849_p4, %p2843_p11 }
 0x430   : > { %2853 = shalt.err (!%p2850_p13)
}
 0x431   : > { %s2944_s5 = smov 128   ;;  %s2945_s11 = smov 8  }
 0x432   : > { %2460 = dma.vmem_to_hbm [thread:$0]  (%p3939_p6), %s3802_s12, 1024, %s3807_s10, %s1871_s3, %s2944_s5, %s2944_s5, %s2945_s11  }
 0x433 PF: > { %s3940_s16 = sld [smem:[#allocation21_spill]]  ;;  %s3941_s13 = sld [smem:[#allocation24_spill]] }
 0x434   : > { %s3942_s18 = sld [smem:[#allocation23_spill]] }
 0x439   : > { %s1901_s30 = sand.u32 1, %s3940_s16   ;;  %p3943_p12 = scmp.ne.s32.totalorder %s3941_s13, 0 }
 0x43a   : > { %p3944_p1 = scmp.ge.s32.totalorder %s3942_s18, 2  ;;  %s1902_s15 = scalar_lea.sflag [#allocation5], %s1901_s30 }
 0x43c   : > { %p2486_p9 = pnand %p3944_p1, %p3943_p12 }
 0x43e   : > { %2895 = dma.done.wait (!%p2486_p9), %s1902_s15, 1024  }
 0x43f   : > { %2897 = vsyncadd (!%p2486_p9), %s1902_s15, 4294966272  ;;  %s28_s29 = sadd.s32 1, %s3942_s18   ;;  %s3945_s8 = sld [smem:[#allocation22_spill]] }
 0x440   : > { %p25_p0 = scmp.ge.s32.totalorder %s28_s29, 4   ;;  %s3946_s26 = sld [smem:[#allocation27_spill]] }
 0x441   : > { %s3947_s19 = sld [smem:[#allocation25_spill]]  ;;  %s3948_s24 = smov %s2904_s25 }
 0x442   : > { %s3950_s27 = smov %s2916_s28  ;;  %27 = sbr.rel (!%p25_p0) target bundleno = 15 (0xf), region = 137 }
 0x445   : > { %s3949_s25 = smov %s3945_s8 }
 0x447   : > { %s3951_s28 = smov %s3947_s19 }
 0x449   :  { %1907 = vsyncpa [#allocation4], 1 }
 0x44a   :  { %1909 = vsyncpa [#allocation4 + $0x1], 1 }
 0x44b   :  { %1910 = vsyncpa [#allocation7], 1 }
 0x44c   :  { %1912 = vsyncpa [#allocation7 + $0x1], 1 }
 0x44d   :  { %1913 = vsyncpa [#allocation10], 1 }
 0x44e   :  { %1914 = vsyncpa [#allocation13], 1 }
 0x44f   :  { %1915 = vsyncpa [#allocation5], 1 }
 0x450   :  { %1917 = vsyncpa [#allocation5 + $0x1], 1 }

</bundles_post_ra>
